<compile_context>
chip_gen: v7x
topology: tpu7x:2x2x1
jax: 0.10.0
libtpu: 0.0.40
codegen_flags: <defaults>
</compile_context>

<pallas_src>
import numpy as np

import jax
import jax.numpy as jnp
from jax.experimental import pallas as pl
from jax.experimental.pallas import tpu as pltpu


# ----------------------------------------------------------------------------
# Host-side constant builders (run once; all constants are batch-independent).
# ----------------------------------------------------------------------------

def _shift_select(h, w, dy, dx):
    """(h*w, h*w): out row (m,q) <- in row (m+dy, q+dx), 0 if out of bounds."""
    r = np.zeros((h * w, h * w), np.float32)
    for m in range(h):
        for q in range(w):
            if m + dy < h and q + dx < w:
                r[m * w + q, (m + dy) * w + q + dx] = 1.0
    return r


def _phase_scatter(h, w, a, b):
    """(2h*2w, h*w): out row (2m+a, 2q+b) <- in row (m,q)."""
    g = np.zeros((2 * h * 2 * w, h * w), np.float32)
    for m in range(h):
        for q in range(w):
            g[(2 * m + a) * 2 * w + 2 * q + b, m * w + q] = 1.0
    return g


def _deconv_weight_cat(w):
    """Block weight matrix for the sub-pixel (phase) form of ConvTranspose2d.

    w: PyTorch layout (Cin, Cout, 3, 3), stride=2, padding=1, output_padding=1.
    Rows: 4 blocks for shifted inputs [x, x(+0,+1), x(+1,+0), x(+1,+1)];
    columns: 4 blocks for output-parity phases [(0,0),(0,1),(1,0),(1,1)].
    """
    cin, cout = w.shape[0], w.shape[1]
    z = jnp.zeros((cin, cout), w.dtype)
    t = lambda ky, kx: w[:, :, ky, kx]                       # (Cin, Cout)
    row_x   = jnp.concatenate([t(1, 1), t(1, 2), t(2, 1), t(2, 2)], axis=1)
    row_x01 = jnp.concatenate([z,       t(1, 0), z,       t(2, 0)], axis=1)
    row_x10 = jnp.concatenate([z,       z,       t(0, 1), t(0, 2)], axis=1)
    row_x11 = jnp.concatenate([z,       z,       z,       t(0, 0)], axis=1)
    return jnp.concatenate([row_x, row_x01, row_x10, row_x11], axis=0)


def prepare_constants(params):
    """Pre-transform weights + build tiny batch-independent constants (once)."""
    f32 = jnp.float32
    par = [(0, 0), (0, 1), (1, 0), (1, 1)]
    sh = [(0, 1), (1, 0), (1, 1)]
    return {
        # conv weights in matmul layout
        "W1": jnp.transpose(params["w1"], (2, 3, 1, 0)).reshape(9, 32).astype(f32),
        "W2": jnp.transpose(params["w2"], (2, 3, 1, 0)).reshape(9, 32, 64).astype(f32),
        # deconv block weights for the phase decomposition
        "W3": _deconv_weight_cat(params["w3"]).astype(f32),          # (256, 128)
        "W4": _deconv_weight_cat(params["w4"]).astype(f32),          # (128, 4)
        "b1": params["b1"].reshape(1, 32).astype(f32),
        "b2": params["b2"].reshape(1, 64).astype(f32),
        "b3": params["b3"].reshape(1, 32).astype(f32),
        "b4": params["b4"].reshape(1, 1).astype(f32),
        # shifted-input selections and phase->pixel scatters (per-example, tiny)
        "R1": jnp.asarray(np.stack([_shift_select(4, 4, dy, dx) for dy, dx in sh])),   # (3,16,16)
        "G1": jnp.asarray(np.stack([_phase_scatter(4, 4, a, b) for a, b in par])),     # (4,64,16)
        "R2": jnp.asarray(np.stack([_shift_select(8, 8, dy, dx) for dy, dx in sh])),   # (3,64,64)
    }


# ----------------------------------------------------------------------------
# The fused per-example Pallas kernel (one grid step = one example).
# ----------------------------------------------------------------------------

def _autoencoder_kernel(a1_ref, w1_ref, b1_ref, w2_ref, b2_ref, w3_ref, b3_ref,
                        w4_ref, b4_ref, r1_ref, g1_ref, r2_ref,
                        out_ref, pad1_ref):
    f32 = jnp.float32

    def dotf(a, b):
        return jnp.dot(a, b, preferred_element_type=f32)

    def pool2x2(x):                       # (h, w, c) -> (h//2, w//2, c), VPU max
        h, w, c = x.shape
        x = x.reshape(h // 2, 2, w, c)
        x = jnp.maximum(x[:, 0, :, :], x[:, 1, :, :])
        x = x.reshape(h // 2, w // 2, 2, c)
        return jnp.maximum(x[:, :, 0, :], x[:, :, 1, :])

    # ---- conv1: 1 -> 32, 3x3 same, ReLU (one MXU matmul on the im2col) ----
    c1 = jnp.maximum(dotf(a1_ref[0], w1_ref[...]) + b1_ref[...], 0.0)    # (256, 32)

    # ---- maxpool 2x2 ----
    p1 = pool2x2(c1.reshape(16, 16, 32))                                 # (8, 8, 32)

    # ---- conv2: 32 -> 64, 3x3 same, ReLU (9 accumulated MXU matmuls) ----
    # zero only the 1-wide halo; the interior is fully overwritten every step
    pad1_ref[0:1, :, :] = jnp.zeros((1, 10, 32), f32)
    pad1_ref[9:10, :, :] = jnp.zeros((1, 10, 32), f32)
    pad1_ref[:, 0:1, :] = jnp.zeros((10, 1, 32), f32)
    pad1_ref[:, 9:10, :] = jnp.zeros((10, 1, 32), f32)
    pad1_ref[1:9, 1:9, :] = p1

    acc2 = jnp.zeros((64, 64), f32)
    for k in range(9):
        ky, kx = k // 3, k % 3
        tap = pad1_ref[ky:ky + 8, kx:kx + 8, :].reshape(64, 32)
        acc2 = acc2 + dotf(tap, w2_ref[k])
    c2 = jnp.maximum(acc2 + b2_ref[...], 0.0)                            # (64, 64)

    # ---- maxpool 2x2 ----
    p2 = pool2x2(c2.reshape(8, 8, 64)).reshape(16, 64)                   # (16, 64)

    # ---- deconv1: 64 -> 32, k3 s2 p1 op1, ReLU (sub-pixel phase form) ----
    xc = jnp.concatenate([p2] + [dotf(r1_ref[i], p2) for i in range(3)],
                         axis=1)                                         # (16, 256)
    ph = dotf(xc, w3_ref[...])                                           # (16, 128)
    d1 = dotf(g1_ref[0], ph[:, 0:32])
    for i in range(1, 4):
        d1 = d1 + dotf(g1_ref[i], ph[:, 32 * i:32 * (i + 1)])
    d1 = jnp.maximum(d1 + b3_ref[...], 0.0)                              # (64, 32)

    # ---- deconv2: 32 -> 1, k3 s2 p1 op1, Sigmoid — PHASE-MAJOR output ----
    yc = jnp.concatenate([d1] + [dotf(r2_ref[i], d1) for i in range(3)],
                         axis=1)                                         # (64, 128)
    o = dotf(yc, w4_ref[...]) + b4_ref[...]                              # (64, 4)
    out_ref[0] = pl.reciprocal(1.0 + jnp.exp(-o), approx=True)           # sigmoid


# ----------------------------------------------------------------------------
# Wrapper.
# ----------------------------------------------------------------------------

def autoencoder_forward(consts, x_nchw):
    n = x_nchw.shape[0]
    x = x_nchw.astype(jnp.float32).reshape(n, 16, 16)       # C == 1
    xpad = jnp.pad(x, ((0, 0), (1, 1), (1, 1)))
    # conv1 im2col (tiny XLA glue): (n, 256, 9), column k = ky*3 + kx
    a1 = jnp.stack([xpad[:, ky:ky + 16, kx:kx + 16]
                    for ky in range(3) for kx in range(3)],
                   axis=-1).reshape(n, 256, 9)

    const_list = [consts["W1"], consts["b1"], consts["W2"], consts["b2"],
                  consts["W3"], consts["b3"], consts["W4"], consts["b4"],
                  consts["R1"], consts["G1"], consts["R2"]]

    def shared(arr):                       # whole array, same block every step
        nd = arr.ndim
        return pl.BlockSpec(arr.shape, lambda i, nd=nd: (0,) * nd)

    per_ex_flops = 2 * (256 * 9 * 32 + 9 * 64 * 32 * 64 + 3 * 16 * 16 * 64
                        + 16 * 256 * 128 + 4 * 64 * 16 * 32
                        + 3 * 64 * 64 * 32 + 64 * 128 * 4)
    bytes_accessed = int(a1.size * 4 + n * 64 * 4 * 4
                         + sum(int(c.size) * 4 for c in const_list))

    ph = pl.pallas_call(
        _autoencoder_kernel,
        out_shape=jax.ShapeDtypeStruct((n, 64, 4), jnp.float32),
        grid=(n,),
        in_specs=[pl.BlockSpec((1, 256, 9), lambda i: (i, 0, 0))]
                 + [shared(c) for c in const_list],
        out_specs=pl.BlockSpec((1, 64, 4), lambda i: (i, 0, 0)),
        scratch_shapes=[pltpu.VMEM((10, 10, 32), jnp.float32)],   # conv2 halo
        compiler_params=pltpu.CompilerParams(
            dimension_semantics=("parallel",),
            vmem_limit_bytes=16 * 1024 * 1024),
        cost_estimate=pl.CostEstimate(
            flops=n * per_ex_flops,
            transcendentals=n * 512,
            bytes_accessed=bytes_accessed),
    )(a1, *const_list)

    # phase-major (n, m*8+q, a*2+b) -> pixels (n, 1, 2m+a, 2q+b)
    y = ph.reshape(n, 8, 8, 2, 2).transpose(0, 1, 3, 2, 4).reshape(n, 1, 16, 16)
    return y


# ----------------------------------------------------------------------------
# Parameters + pure-JAX reference (for a correctness cross-check).
# ----------------------------------------------------------------------------

def init_params(key):
    ks = jax.random.split(key, 8)

    def uni(k, shape, fan_in):
        bound = 1.0 / jnp.sqrt(float(fan_in))
        return jax.random.uniform(k, shape, jnp.float32, -bound, bound)

    return {
        # encoder (Conv2d weight layout: (Cout, Cin, kh, kw))
        "w1": uni(ks[0], (32, 1, 3, 3), 1 * 9),   "b1": uni(ks[1], (32,), 1 * 9),
        "w2": uni(ks[2], (64, 32, 3, 3), 32 * 9), "b2": uni(ks[3], (64,), 32 * 9),
        # decoder (ConvTranspose2d weight layout: (Cin, Cout, kh, kw))
        "w3": uni(ks[4], (64, 32, 3, 3), 64 * 9), "b3": uni(ks[5], (32,), 64 * 9),
        "w4": uni(ks[6], (32, 1, 3, 3), 32 * 9),  "b4": uni(ks[7], (1,), 32 * 9),
    }


def _reference_forward(params, x):
    """Plain-JAX (XLA) forward with PyTorch semantics, validation only."""
    dn = ("NCHW", "OIHW", "NCHW")

    def conv(h, w, b):
        y = jax.lax.conv_general_dilated(h, w, (1, 1), ((1, 1), (1, 1)),
                                         dimension_numbers=dn)
        return y + b.reshape(1, -1, 1, 1)

    def deconv(h, w, b):
        wt = jnp.transpose(w, (1, 0, 2, 3))[:, :, ::-1, ::-1]
        y = jax.lax.conv_general_dilated(h, wt, (1, 1), ((1, 2), (1, 2)),
                                         lhs_dilation=(2, 2),
                                         dimension_numbers=dn)
        return y + b.reshape(1, -1, 1, 1)

    def pool(h):
        return jax.lax.reduce_window(h, -jnp.inf, jax.lax.max,
                                     (1, 1, 2, 2), (1, 1, 2, 2), "VALID")

    h = pool(jax.nn.relu(conv(x, params["w1"], params["b1"])))
    h = pool(jax.nn.relu(conv(h, params["w2"], params["b2"])))
    h = jax.nn.relu(deconv(h, params["w3"], params["b3"]))
    return jax.nn.sigmoid(deconv(h, params["w4"], params["b4"]))


if __name__ == "__main__":
    key = jax.random.PRNGKey(0)
    k_param, k_x = jax.random.split(key)
    params = init_params(k_param)
    x = jax.random.normal(k_x, (2, 1, 16, 16), jnp.float32)    # NCHW, 1 channel

    consts = prepare_constants(params)                         # host-side, once
    fwd = jax.jit(autoencoder_forward)
    y = jax.block_until_ready(fwd(consts, x))

    assert y.shape == (2, 1, 16, 16), y.shape
    assert y.dtype == jnp.float32
    assert bool(jnp.all((y > -1e-5) & (y < 1.0 + 1e-5)))        # sigmoid range

    ref = _reference_forward(params, x)
    max_err = float(jnp.max(jnp.abs(y - ref)))
    # 2e-3 budget covers the approx (EUP vrcp) reciprocal in the sigmoid
    assert max_err < 2e-3, f"mismatch vs reference: {max_err}"

    print("KERNEL_OK")
</pallas_src>

<mosaic_0001>
module attributes {stable_mosaic.version = 11 : i64} {
  func.func @_autoencoder_kernel(%arg0: i32, %arg1: memref<1x256x9xf32, #tpu.memory_space<vmem>>, %arg2: memref<9x32xf32, #tpu.memory_space<vmem>>, %arg3: memref<1x32xf32, #tpu.memory_space<vmem>>, %arg4: memref<9x32x64xf32, #tpu.memory_space<vmem>>, %arg5: memref<1x64xf32, #tpu.memory_space<vmem>>, %arg6: memref<256x128xf32, #tpu.memory_space<vmem>>, %arg7: memref<1x32xf32, #tpu.memory_space<vmem>>, %arg8: memref<128x4xf32, #tpu.memory_space<vmem>>, %arg9: memref<1x1xf32, #tpu.memory_space<vmem>>, %arg10: memref<3x16x16xf32, #tpu.memory_space<vmem>>, %arg11: memref<4x64x16xf32, #tpu.memory_space<vmem>>, %arg12: memref<3x64x64xf32, #tpu.memory_space<vmem>>, %arg13: memref<1x64x4xf32, #tpu.memory_space<vmem>>, %arg14: memref<10x10x32xf32, #tpu.memory_space<vmem>>) attributes {dimension_semantics = [#tpu.dimension_semantics<parallel>], iteration_bounds = array<i64: 2>, scalar_prefetch = 0 : i64, scratch_operands = 1 : i64, tpu.core_type = #tpu.core_type<tc>, window_params = [{transform_indices = @transform_0, window_bounds = array<i64: 1, 256, 9>}, {pipeline_mode = #tpu.pipeline_mode<synchronous>, transform_indices = @transform_1, window_bounds = array<i64: 9, 32>}, {pipeline_mode = #tpu.pipeline_mode<synchronous>, transform_indices = @transform_2, window_bounds = array<i64: 1, 32>}, {pipeline_mode = #tpu.pipeline_mode<synchronous>, transform_indices = @transform_3, window_bounds = array<i64: 9, 32, 64>}, {pipeline_mode = #tpu.pipeline_mode<synchronous>, transform_indices = @transform_4, window_bounds = array<i64: 1, 64>}, {pipeline_mode = #tpu.pipeline_mode<synchronous>, transform_indices = @transform_5, window_bounds = array<i64: 256, 128>}, {pipeline_mode = #tpu.pipeline_mode<synchronous>, transform_indices = @transform_6, window_bounds = array<i64: 1, 32>}, {pipeline_mode = #tpu.pipeline_mode<synchronous>, transform_indices = @transform_7, window_bounds = array<i64: 128, 4>}, {pipeline_mode = #tpu.pipeline_mode<synchronous>, transform_indices = @transform_8, window_bounds = array<i64: 1, 1>}, {pipeline_mode = #tpu.pipeline_mode<synchronous>, transform_indices = @transform_9, window_bounds = array<i64: 3, 16, 16>}, {pipeline_mode = #tpu.pipeline_mode<synchronous>, transform_indices = @transform_10, window_bounds = array<i64: 4, 64, 16>}, {pipeline_mode = #tpu.pipeline_mode<synchronous>, transform_indices = @transform_11, window_bounds = array<i64: 3, 64, 64>}, {transform_indices = @transform_12, window_bounds = array<i64: 1, 64, 4>}]} {
    %c0 = arith.constant 0 : index
    %c0_0 = arith.constant 0 : index
    %c0_1 = arith.constant 0 : index
    %0 = vector.load %arg1[%c0, %c0_0, %c0_1] : memref<1x256x9xf32, #tpu.memory_space<vmem>>, vector<1x256x9xf32>
    %1 = vector.shape_cast %0 : vector<1x256x9xf32> to vector<256x9xf32>
    %c0_2 = arith.constant 0 : index
    %c0_3 = arith.constant 0 : index
    %2 = vector.load %arg2[%c0_2, %c0_3] : memref<9x32xf32, #tpu.memory_space<vmem>>, vector<9x32xf32>
    %cst = arith.constant dense<0.000000e+00> : vector<256x32xf32>
    %3 = tpu.matmul %1, %2, %cst {dimension_numbers = #tpu.dot_dimension_numbers<[1], [0], [0], [1], [0, 0, 1, 1], [], []>} : vector<256x9xf32>, vector<9x32xf32>, vector<256x32xf32> -> vector<256x32xf32>
    %c0_4 = arith.constant 0 : index
    %c0_5 = arith.constant 0 : index
    %4 = vector.load %arg3[%c0_4, %c0_5] : memref<1x32xf32, #tpu.memory_space<vmem>>, vector<1x32xf32>
    %5 = vector.broadcast %4 : vector<1x32xf32> to vector<256x32xf32>
    %6 = arith.addf %3, %5 : vector<256x32xf32>
    %cst_6 = arith.constant 0.000000e+00 : f32
    %7 = vector.broadcast %cst_6 : f32 to vector<256x32xf32>
    %8 = arith.maximumf %6, %7 : vector<256x32xf32>
    %9 = vector.shape_cast %8 : vector<256x32xf32> to vector<16x16x32xf32>
    %10 = vector.shape_cast %9 : vector<16x16x32xf32> to vector<8x2x16x32xf32>
    %11 = vector.extract_strided_slice %10 {offsets = [0, 0, 0, 0], sizes = [8, 1, 16, 32], strides = [1, 1, 1, 1]} : vector<8x2x16x32xf32> to vector<8x1x16x32xf32>
    %12 = vector.shape_cast %11 : vector<8x1x16x32xf32> to vector<8x16x32xf32>
    %13 = vector.extract_strided_slice %10 {offsets = [0, 1, 0, 0], sizes = [8, 1, 16, 32], strides = [1, 1, 1, 1]} : vector<8x2x16x32xf32> to vector<8x1x16x32xf32>
    %14 = vector.shape_cast %13 : vector<8x1x16x32xf32> to vector<8x16x32xf32>
    %15 = arith.maximumf %12, %14 : vector<8x16x32xf32>
    %16 = vector.shape_cast %15 : vector<8x16x32xf32> to vector<8x8x2x32xf32>
    %17 = vector.extract_strided_slice %16 {offsets = [0, 0, 0, 0], sizes = [8, 8, 1, 32], strides = [1, 1, 1, 1]} : vector<8x8x2x32xf32> to vector<8x8x1x32xf32>
    %18 = vector.shape_cast %17 : vector<8x8x1x32xf32> to vector<8x8x32xf32>
    %19 = vector.extract_strided_slice %16 {offsets = [0, 0, 1, 0], sizes = [8, 8, 1, 32], strides = [1, 1, 1, 1]} : vector<8x8x2x32xf32> to vector<8x8x1x32xf32>
    %20 = vector.shape_cast %19 : vector<8x8x1x32xf32> to vector<8x8x32xf32>
    %21 = arith.maximumf %18, %20 : vector<8x8x32xf32>
    %cst_7 = arith.constant 0.000000e+00 : f32
    %22 = vector.broadcast %cst_7 : f32 to vector<1x10x32xf32>
    %c0_8 = arith.constant 0 : index
    %c0_9 = arith.constant 0 : index
    %c0_10 = arith.constant 0 : index
    %23 = vector.load %arg14[%c0_8, %c0_9, %c0_10] : memref<10x10x32xf32, #tpu.memory_space<vmem>>, vector<1x10x32xf32>
    tpu.vector_store %arg14[%c0_8, %c0_9, %c0_10], %22 {strides = array<i32>} : memref<10x10x32xf32, #tpu.memory_space<vmem>>, vector<1x10x32xf32>,
    %cst_11 = arith.constant 0.000000e+00 : f32
    %24 = vector.broadcast %cst_11 : f32 to vector<1x10x32xf32>
    %c9 = arith.constant 9 : index
    %c0_12 = arith.constant 0 : index
    %c0_13 = arith.constant 0 : index
    %25 = vector.load %arg14[%c9, %c0_12, %c0_13] : memref<10x10x32xf32, #tpu.memory_space<vmem>>, vector<1x10x32xf32>
    tpu.vector_store %arg14[%c9, %c0_12, %c0_13], %24 {strides = array<i32>} : memref<10x10x32xf32, #tpu.memory_space<vmem>>, vector<1x10x32xf32>,
    %cst_14 = arith.constant 0.000000e+00 : f32
    %26 = vector.broadcast %cst_14 : f32 to vector<10x1x32xf32>
    %c0_15 = arith.constant 0 : index
    %c0_16 = arith.constant 0 : index
    %c0_17 = arith.constant 0 : index
    %27 = vector.load %arg14[%c0_15, %c0_16, %c0_17] : memref<10x10x32xf32, #tpu.memory_space<vmem>>, vector<10x1x32xf32>
    tpu.vector_store %arg14[%c0_15, %c0_16, %c0_17], %26 {strides = array<i32>} : memref<10x10x32xf32, #tpu.memory_space<vmem>>, vector<10x1x32xf32>,
    %cst_18 = arith.constant 0.000000e+00 : f32
    %28 = vector.broadcast %cst_18 : f32 to vector<10x1x32xf32>
    %c0_19 = arith.constant 0 : index
    %c9_20 = arith.constant 9 : index
    %c0_21 = arith.constant 0 : index
    %29 = vector.load %arg14[%c0_19, %c9_20, %c0_21] : memref<10x10x32xf32, #tpu.memory_space<vmem>>, vector<10x1x32xf32>
    tpu.vector_store %arg14[%c0_19, %c9_20, %c0_21], %28 {strides = array<i32>} : memref<10x10x32xf32, #tpu.memory_space<vmem>>, vector<10x1x32xf32>,
    %c1 = arith.constant 1 : index
    %c1_22 = arith.constant 1 : index
    %c0_23 = arith.constant 0 : index
    %30 = vector.load %arg14[%c1, %c1_22, %c0_23] : memref<10x10x32xf32, #tpu.memory_space<vmem>>, vector<8x8x32xf32>
    tpu.vector_store %arg14[%c1, %c1_22, %c0_23], %21 {strides = array<i32>} : memref<10x10x32xf32, #tpu.memory_space<vmem>>, vector<8x8x32xf32>,
    %cst_24 = arith.constant 0.000000e+00 : f32
    %31 = vector.broadcast %cst_24 : f32 to vector<64x64xf32>
    %c0_25 = arith.constant 0 : index
    %c0_26 = arith.constant 0 : index
    %c0_27 = arith.constant 0 : index
    %32 = vector.load %arg14[%c0_25, %c0_26, %c0_27] : memref<10x10x32xf32, #tpu.memory_space<vmem>>, vector<8x8x32xf32>
    %33 = vector.shape_cast %32 : vector<8x8x32xf32> to vector<64x32xf32>
    %c0_28 = arith.constant 0 : index
    %c0_29 = arith.constant 0 : index
    %c0_30 = arith.constant 0 : index
    %34 = vector.load %arg4[%c0_28, %c0_29, %c0_30] : memref<9x32x64xf32, #tpu.memory_space<vmem>>, vector<1x32x64xf32>
    %35 = vector.shape_cast %34 : vector<1x32x64xf32> to vector<32x64xf32>
    %cst_31 = arith.constant dense<0.000000e+00> : vector<64x64xf32>
    %36 = tpu.matmul %33, %35, %cst_31 {dimension_numbers = #tpu.dot_dimension_numbers<[1], [0], [0], [1], [0, 0, 1, 1], [], []>} : vector<64x32xf32>, vector<32x64xf32>, vector<64x64xf32> -> vector<64x64xf32>
    %37 = arith.addf %31, %36 : vector<64x64xf32>
    %c0_32 = arith.constant 0 : index
    %c1_33 = arith.constant 1 : index
    %c0_34 = arith.constant 0 : index
    %38 = vector.load %arg14[%c0_32, %c1_33, %c0_34] : memref<10x10x32xf32, #tpu.memory_space<vmem>>, vector<8x8x32xf32>
    %39 = vector.shape_cast %38 : vector<8x8x32xf32> to vector<64x32xf32>
    %c1_35 = arith.constant 1 : index
    %c0_36 = arith.constant 0 : index
    %c0_37 = arith.constant 0 : index
    %40 = vector.load %arg4[%c1_35, %c0_36, %c0_37] : memref<9x32x64xf32, #tpu.memory_space<vmem>>, vector<1x32x64xf32>
    %41 = vector.shape_cast %40 : vector<1x32x64xf32> to vector<32x64xf32>
    %cst_38 = arith.constant dense<0.000000e+00> : vector<64x64xf32>
    %42 = tpu.matmul %39, %41, %cst_38 {dimension_numbers = #tpu.dot_dimension_numbers<[1], [0], [0], [1], [0, 0, 1, 1], [], []>} : vector<64x32xf32>, vector<32x64xf32>, vector<64x64xf32> -> vector<64x64xf32>
    %43 = arith.addf %37, %42 : vector<64x64xf32>
    %c0_39 = arith.constant 0 : index
    %c2 = arith.constant 2 : index
    %c0_40 = arith.constant 0 : index
    %44 = vector.load %arg14[%c0_39, %c2, %c0_40] : memref<10x10x32xf32, #tpu.memory_space<vmem>>, vector<8x8x32xf32>
    %45 = vector.shape_cast %44 : vector<8x8x32xf32> to vector<64x32xf32>
    %c2_41 = arith.constant 2 : index
    %c0_42 = arith.constant 0 : index
    %c0_43 = arith.constant 0 : index
    %46 = vector.load %arg4[%c2_41, %c0_42, %c0_43] : memref<9x32x64xf32, #tpu.memory_space<vmem>>, vector<1x32x64xf32>
    %47 = vector.shape_cast %46 : vector<1x32x64xf32> to vector<32x64xf32>
    %cst_44 = arith.constant dense<0.000000e+00> : vector<64x64xf32>
    %48 = tpu.matmul %45, %47, %cst_44 {dimension_numbers = #tpu.dot_dimension_numbers<[1], [0], [0], [1], [0, 0, 1, 1], [], []>} : vector<64x32xf32>, vector<32x64xf32>, vector<64x64xf32> -> vector<64x64xf32>
    %49 = arith.addf %43, %48 : vector<64x64xf32>
    %c1_45 = arith.constant 1 : index
    %c0_46 = arith.constant 0 : index
    %c0_47 = arith.constant 0 : index
    %50 = vector.load %arg14[%c1_45, %c0_46, %c0_47] : memref<10x10x32xf32, #tpu.memory_space<vmem>>, vector<8x8x32xf32>
    %51 = vector.shape_cast %50 : vector<8x8x32xf32> to vector<64x32xf32>
    %c3 = arith.constant 3 : index
    %c0_48 = arith.constant 0 : index
    %c0_49 = arith.constant 0 : index
    %52 = vector.load %arg4[%c3, %c0_48, %c0_49] : memref<9x32x64xf32, #tpu.memory_space<vmem>>, vector<1x32x64xf32>
    %53 = vector.shape_cast %52 : vector<1x32x64xf32> to vector<32x64xf32>
    %cst_50 = arith.constant dense<0.000000e+00> : vector<64x64xf32>
    %54 = tpu.matmul %51, %53, %cst_50 {dimension_numbers = #tpu.dot_dimension_numbers<[1], [0], [0], [1], [0, 0, 1, 1], [], []>} : vector<64x32xf32>, vector<32x64xf32>, vector<64x64xf32> -> vector<64x64xf32>
    %55 = arith.addf %49, %54 : vector<64x64xf32>
    %c1_51 = arith.constant 1 : index
    %c1_52 = arith.constant 1 : index
    %c0_53 = arith.constant 0 : index
    %56 = vector.load %arg14[%c1_51, %c1_52, %c0_53] : memref<10x10x32xf32, #tpu.memory_space<vmem>>, vector<8x8x32xf32>
    %57 = vector.shape_cast %56 : vector<8x8x32xf32> to vector<64x32xf32>
    %c4 = arith.constant 4 : index
    %c0_54 = arith.constant 0 : index
    %c0_55 = arith.constant 0 : index
    %58 = vector.load %arg4[%c4, %c0_54, %c0_55] : memref<9x32x64xf32, #tpu.memory_space<vmem>>, vector<1x32x64xf32>
    %59 = vector.shape_cast %58 : vector<1x32x64xf32> to vector<32x64xf32>
    %cst_56 = arith.constant dense<0.000000e+00> : vector<64x64xf32>
    %60 = tpu.matmul %57, %59, %cst_56 {dimension_numbers = #tpu.dot_dimension_numbers<[1], [0], [0], [1], [0, 0, 1, 1], [], []>} : vector<64x32xf32>, vector<32x64xf32>, vector<64x64xf32> -> vector<64x64xf32>
    %61 = arith.addf %55, %60 : vector<64x64xf32>
    %c1_57 = arith.constant 1 : index
    %c2_58 = arith.constant 2 : index
    %c0_59 = arith.constant 0 : index
    %62 = vector.load %arg14[%c1_57, %c2_58, %c0_59] : memref<10x10x32xf32, #tpu.memory_space<vmem>>, vector<8x8x32xf32>
    %63 = vector.shape_cast %62 : vector<8x8x32xf32> to vector<64x32xf32>
    %c5 = arith.constant 5 : index
    %c0_60 = arith.constant 0 : index
    %c0_61 = arith.constant 0 : index
    %64 = vector.load %arg4[%c5, %c0_60, %c0_61] : memref<9x32x64xf32, #tpu.memory_space<vmem>>, vector<1x32x64xf32>
    %65 = vector.shape_cast %64 : vector<1x32x64xf32> to vector<32x64xf32>
    %cst_62 = arith.constant dense<0.000000e+00> : vector<64x64xf32>
    %66 = tpu.matmul %63, %65, %cst_62 {dimension_numbers = #tpu.dot_dimension_numbers<[1], [0], [0], [1], [0, 0, 1, 1], [], []>} : vector<64x32xf32>, vector<32x64xf32>, vector<64x64xf32> -> vector<64x64xf32>
    %67 = arith.addf %61, %66 : vector<64x64xf32>
    %c2_63 = arith.constant 2 : index
    %c0_64 = arith.constant 0 : index
    %c0_65 = arith.constant 0 : index
    %68 = vector.load %arg14[%c2_63, %c0_64, %c0_65] : memref<10x10x32xf32, #tpu.memory_space<vmem>>, vector<8x8x32xf32>
    %69 = vector.shape_cast %68 : vector<8x8x32xf32> to vector<64x32xf32>
    %c6 = arith.constant 6 : index
    %c0_66 = arith.constant 0 : index
    %c0_67 = arith.constant 0 : index
    %70 = vector.load %arg4[%c6, %c0_66, %c0_67] : memref<9x32x64xf32, #tpu.memory_space<vmem>>, vector<1x32x64xf32>
    %71 = vector.shape_cast %70 : vector<1x32x64xf32> to vector<32x64xf32>
    %cst_68 = arith.constant dense<0.000000e+00> : vector<64x64xf32>
    %72 = tpu.matmul %69, %71, %cst_68 {dimension_numbers = #tpu.dot_dimension_numbers<[1], [0], [0], [1], [0, 0, 1, 1], [], []>} : vector<64x32xf32>, vector<32x64xf32>, vector<64x64xf32> -> vector<64x64xf32>
    %73 = arith.addf %67, %72 : vector<64x64xf32>
    %c2_69 = arith.constant 2 : index
    %c1_70 = arith.constant 1 : index
    %c0_71 = arith.constant 0 : index
    %74 = vector.load %arg14[%c2_69, %c1_70, %c0_71] : memref<10x10x32xf32, #tpu.memory_space<vmem>>, vector<8x8x32xf32>
    %75 = vector.shape_cast %74 : vector<8x8x32xf32> to vector<64x32xf32>
    %c7 = arith.constant 7 : index
    %c0_72 = arith.constant 0 : index
    %c0_73 = arith.constant 0 : index
    %76 = vector.load %arg4[%c7, %c0_72, %c0_73] : memref<9x32x64xf32, #tpu.memory_space<vmem>>, vector<1x32x64xf32>
    %77 = vector.shape_cast %76 : vector<1x32x64xf32> to vector<32x64xf32>
    %cst_74 = arith.constant dense<0.000000e+00> : vector<64x64xf32>
    %78 = tpu.matmul %75, %77, %cst_74 {dimension_numbers = #tpu.dot_dimension_numbers<[1], [0], [0], [1], [0, 0, 1, 1], [], []>} : vector<64x32xf32>, vector<32x64xf32>, vector<64x64xf32> -> vector<64x64xf32>
    %79 = arith.addf %73, %78 : vector<64x64xf32>
    %c2_75 = arith.constant 2 : index
    %c2_76 = arith.constant 2 : index
    %c0_77 = arith.constant 0 : index
    %80 = vector.load %arg14[%c2_75, %c2_76, %c0_77] : memref<10x10x32xf32, #tpu.memory_space<vmem>>, vector<8x8x32xf32>
    %81 = vector.shape_cast %80 : vector<8x8x32xf32> to vector<64x32xf32>
    %c8 = arith.constant 8 : index
    %c0_78 = arith.constant 0 : index
    %c0_79 = arith.constant 0 : index
    %82 = vector.load %arg4[%c8, %c0_78, %c0_79] : memref<9x32x64xf32, #tpu.memory_space<vmem>>, vector<1x32x64xf32>
    %83 = vector.shape_cast %82 : vector<1x32x64xf32> to vector<32x64xf32>
    %cst_80 = arith.constant dense<0.000000e+00> : vector<64x64xf32>
    %84 = tpu.matmul %81, %83, %cst_80 {dimension_numbers = #tpu.dot_dimension_numbers<[1], [0], [0], [1], [0, 0, 1, 1], [], []>} : vector<64x32xf32>, vector<32x64xf32>, vector<64x64xf32> -> vector<64x64xf32>
    %85 = arith.addf %79, %84 : vector<64x64xf32>
    %c0_81 = arith.constant 0 : index
    %c0_82 = arith.constant 0 : index
    %86 = vector.load %arg5[%c0_81, %c0_82] : memref<1x64xf32, #tpu.memory_space<vmem>>, vector<1x64xf32>
    %87 = vector.broadcast %86 : vector<1x64xf32> to vector<64x64xf32>
    %88 = arith.addf %85, %87 : vector<64x64xf32>
    %cst_83 = arith.constant 0.000000e+00 : f32
    %89 = vector.broadcast %cst_83 : f32 to vector<64x64xf32>
    %90 = arith.maximumf %88, %89 : vector<64x64xf32>
    %91 = vector.shape_cast %90 : vector<64x64xf32> to vector<8x8x64xf32>
    %92 = vector.shape_cast %91 : vector<8x8x64xf32> to vector<4x2x8x64xf32>
    %93 = vector.extract_strided_slice %92 {offsets = [0, 0, 0, 0], sizes = [4, 1, 8, 64], strides = [1, 1, 1, 1]} : vector<4x2x8x64xf32> to vector<4x1x8x64xf32>
    %94 = vector.shape_cast %93 : vector<4x1x8x64xf32> to vector<4x8x64xf32>
    %95 = vector.extract_strided_slice %92 {offsets = [0, 1, 0, 0], sizes = [4, 1, 8, 64], strides = [1, 1, 1, 1]} : vector<4x2x8x64xf32> to vector<4x1x8x64xf32>
    %96 = vector.shape_cast %95 : vector<4x1x8x64xf32> to vector<4x8x64xf32>
    %97 = arith.maximumf %94, %96 : vector<4x8x64xf32>
    %98 = vector.shape_cast %97 : vector<4x8x64xf32> to vector<4x4x2x64xf32>
    %99 = vector.extract_strided_slice %98 {offsets = [0, 0, 0, 0], sizes = [4, 4, 1, 64], strides = [1, 1, 1, 1]} : vector<4x4x2x64xf32> to vector<4x4x1x64xf32>
    %100 = vector.shape_cast %99 : vector<4x4x1x64xf32> to vector<4x4x64xf32>
    %101 = vector.extract_strided_slice %98 {offsets = [0, 0, 1, 0], sizes = [4, 4, 1, 64], strides = [1, 1, 1, 1]} : vector<4x4x2x64xf32> to vector<4x4x1x64xf32>
    %102 = vector.shape_cast %101 : vector<4x4x1x64xf32> to vector<4x4x64xf32>
    %103 = arith.maximumf %100, %102 : vector<4x4x64xf32>
    %104 = vector.shape_cast %103 : vector<4x4x64xf32> to vector<16x64xf32>
    %c0_84 = arith.constant 0 : index
    %c0_85 = arith.constant 0 : index
    %c0_86 = arith.constant 0 : index
    %105 = vector.load %arg10[%c0_84, %c0_85, %c0_86] : memref<3x16x16xf32, #tpu.memory_space<vmem>>, vector<1x16x16xf32>
    %106 = vector.shape_cast %105 : vector<1x16x16xf32> to vector<16x16xf32>
    %cst_87 = arith.constant dense<0.000000e+00> : vector<16x64xf32>
    %107 = tpu.matmul %106, %104, %cst_87 {dimension_numbers = #tpu.dot_dimension_numbers<[1], [0], [0], [1], [0, 0, 1, 1], [], []>} : vector<16x16xf32>, vector<16x64xf32>, vector<16x64xf32> -> vector<16x64xf32>
    %c1_88 = arith.constant 1 : index
    %c0_89 = arith.constant 0 : index
    %c0_90 = arith.constant 0 : index
    %108 = vector.load %arg10[%c1_88, %c0_89, %c0_90] : memref<3x16x16xf32, #tpu.memory_space<vmem>>, vector<1x16x16xf32>
    %109 = vector.shape_cast %108 : vector<1x16x16xf32> to vector<16x16xf32>
    %cst_91 = arith.constant dense<0.000000e+00> : vector<16x64xf32>
    %110 = tpu.matmul %109, %104, %cst_91 {dimension_numbers = #tpu.dot_dimension_numbers<[1], [0], [0], [1], [0, 0, 1, 1], [], []>} : vector<16x16xf32>, vector<16x64xf32>, vector<16x64xf32> -> vector<16x64xf32>
    %c2_92 = arith.constant 2 : index
    %c0_93 = arith.constant 0 : index
    %c0_94 = arith.constant 0 : index
    %111 = vector.load %arg10[%c2_92, %c0_93, %c0_94] : memref<3x16x16xf32, #tpu.memory_space<vmem>>, vector<1x16x16xf32>
    %112 = vector.shape_cast %111 : vector<1x16x16xf32> to vector<16x16xf32>
    %cst_95 = arith.constant dense<0.000000e+00> : vector<16x64xf32>
    %113 = tpu.matmul %112, %104, %cst_95 {dimension_numbers = #tpu.dot_dimension_numbers<[1], [0], [0], [1], [0, 0, 1, 1], [], []>} : vector<16x16xf32>, vector<16x64xf32>, vector<16x64xf32> -> vector<16x64xf32>
    %114 = tpu.concatenate %104, %107, %110, %113 in 1 : vector<16x64xf32>, vector<16x64xf32>, vector<16x64xf32>, vector<16x64xf32> -> vector<16x256xf32>
    %c0_96 = arith.constant 0 : index
    %c0_97 = arith.constant 0 : index
    %115 = vector.load %arg6[%c0_96, %c0_97] : memref<256x128xf32, #tpu.memory_space<vmem>>, vector<256x128xf32>
    %cst_98 = arith.constant dense<0.000000e+00> : vector<16x128xf32>
    %116 = tpu.matmul %114, %115, %cst_98 {dimension_numbers = #tpu.dot_dimension_numbers<[1], [0], [0], [1], [0, 0, 1, 1], [], []>} : vector<16x256xf32>, vector<256x128xf32>, vector<16x128xf32> -> vector<16x128xf32>
    %c0_99 = arith.constant 0 : index
    %c0_100 = arith.constant 0 : index
    %c0_101 = arith.constant 0 : index
    %117 = vector.load %arg11[%c0_99, %c0_100, %c0_101] : memref<4x64x16xf32, #tpu.memory_space<vmem>>, vector<1x64x16xf32>
    %118 = vector.shape_cast %117 : vector<1x64x16xf32> to vector<64x16xf32>
    %119 = vector.extract_strided_slice %116 {offsets = [0, 0], sizes = [16, 32], strides = [1, 1]} : vector<16x128xf32> to vector<16x32xf32>
    %cst_102 = arith.constant dense<0.000000e+00> : vector<64x32xf32>
    %120 = tpu.matmul %118, %119, %cst_102 {dimension_numbers = #tpu.dot_dimension_numbers<[1], [0], [0], [1], [0, 0, 1, 1], [], []>} : vector<64x16xf32>, vector<16x32xf32>, vector<64x32xf32> -> vector<64x32xf32>
    %c1_103 = arith.constant 1 : index
    %c0_104 = arith.constant 0 : index
    %c0_105 = arith.constant 0 : index
    %121 = vector.load %arg11[%c1_103, %c0_104, %c0_105] : memref<4x64x16xf32, #tpu.memory_space<vmem>>, vector<1x64x16xf32>
    %122 = vector.shape_cast %121 : vector<1x64x16xf32> to vector<64x16xf32>
    %123 = vector.extract_strided_slice %116 {offsets = [0, 32], sizes = [16, 32], strides = [1, 1]} : vector<16x128xf32> to vector<16x32xf32>
    %cst_106 = arith.constant dense<0.000000e+00> : vector<64x32xf32>
    %124 = tpu.matmul %122, %123, %cst_106 {dimension_numbers = #tpu.dot_dimension_numbers<[1], [0], [0], [1], [0, 0, 1, 1], [], []>} : vector<64x16xf32>, vector<16x32xf32>, vector<64x32xf32> -> vector<64x32xf32>
    %125 = arith.addf %120, %124 : vector<64x32xf32>
    %c2_107 = arith.constant 2 : index
    %c0_108 = arith.constant 0 : index
    %c0_109 = arith.constant 0 : index
    %126 = vector.load %arg11[%c2_107, %c0_108, %c0_109] : memref<4x64x16xf32, #tpu.memory_space<vmem>>, vector<1x64x16xf32>
    %127 = vector.shape_cast %126 : vector<1x64x16xf32> to vector<64x16xf32>
    %128 = vector.extract_strided_slice %116 {offsets = [0, 64], sizes = [16, 32], strides = [1, 1]} : vector<16x128xf32> to vector<16x32xf32>
    %cst_110 = arith.constant dense<0.000000e+00> : vector<64x32xf32>
    %129 = tpu.matmul %127, %128, %cst_110 {dimension_numbers = #tpu.dot_dimension_numbers<[1], [0], [0], [1], [0, 0, 1, 1], [], []>} : vector<64x16xf32>, vector<16x32xf32>, vector<64x32xf32> -> vector<64x32xf32>
    %130 = arith.addf %125, %129 : vector<64x32xf32>
    %c3_111 = arith.constant 3 : index
    %c0_112 = arith.constant 0 : index
    %c0_113 = arith.constant 0 : index
    %131 = vector.load %arg11[%c3_111, %c0_112, %c0_113] : memref<4x64x16xf32, #tpu.memory_space<vmem>>, vector<1x64x16xf32>
    %132 = vector.shape_cast %131 : vector<1x64x16xf32> to vector<64x16xf32>
    %133 = vector.extract_strided_slice %116 {offsets = [0, 96], sizes = [16, 32], strides = [1, 1]} : vector<16x128xf32> to vector<16x32xf32>
    %cst_114 = arith.constant dense<0.000000e+00> : vector<64x32xf32>
    %134 = tpu.matmul %132, %133, %cst_114 {dimension_numbers = #tpu.dot_dimension_numbers<[1], [0], [0], [1], [0, 0, 1, 1], [], []>} : vector<64x16xf32>, vector<16x32xf32>, vector<64x32xf32> -> vector<64x32xf32>
    %135 = arith.addf %130, %134 : vector<64x32xf32>
    %c0_115 = arith.constant 0 : index
    %c0_116 = arith.constant 0 : index
    %136 = vector.load %arg7[%c0_115, %c0_116] : memref<1x32xf32, #tpu.memory_space<vmem>>, vector<1x32xf32>
    %137 = vector.broadcast %136 : vector<1x32xf32> to vector<64x32xf32>
    %138 = arith.addf %135, %137 : vector<64x32xf32>
    %cst_117 = arith.constant 0.000000e+00 : f32
    %139 = vector.broadcast %cst_117 : f32 to vector<64x32xf32>
    %140 = arith.maximumf %138, %139 : vector<64x32xf32>
    %c0_118 = arith.constant 0 : index
    %c0_119 = arith.constant 0 : index
    %c0_120 = arith.constant 0 : index
    %141 = vector.load %arg12[%c0_118, %c0_119, %c0_120] : memref<3x64x64xf32, #tpu.memory_space<vmem>>, vector<1x64x64xf32>
    %142 = vector.shape_cast %141 : vector<1x64x64xf32> to vector<64x64xf32>
    %cst_121 = arith.constant dense<0.000000e+00> : vector<64x32xf32>
    %143 = tpu.matmul %142, %140, %cst_121 {dimension_numbers = #tpu.dot_dimension_numbers<[1], [0], [0], [1], [0, 0, 1, 1], [], []>} : vector<64x64xf32>, vector<64x32xf32>, vector<64x32xf32> -> vector<64x32xf32>
    %c1_122 = arith.constant 1 : index
    %c0_123 = arith.constant 0 : index
    %c0_124 = arith.constant 0 : index
    %144 = vector.load %arg12[%c1_122, %c0_123, %c0_124] : memref<3x64x64xf32, #tpu.memory_space<vmem>>, vector<1x64x64xf32>
    %145 = vector.shape_cast %144 : vector<1x64x64xf32> to vector<64x64xf32>
    %cst_125 = arith.constant dense<0.000000e+00> : vector<64x32xf32>
    %146 = tpu.matmul %145, %140, %cst_125 {dimension_numbers = #tpu.dot_dimension_numbers<[1], [0], [0], [1], [0, 0, 1, 1], [], []>} : vector<64x64xf32>, vector<64x32xf32>, vector<64x32xf32> -> vector<64x32xf32>
    %c2_126 = arith.constant 2 : index
    %c0_127 = arith.constant 0 : index
    %c0_128 = arith.constant 0 : index
    %147 = vector.load %arg12[%c2_126, %c0_127, %c0_128] : memref<3x64x64xf32, #tpu.memory_space<vmem>>, vector<1x64x64xf32>
    %148 = vector.shape_cast %147 : vector<1x64x64xf32> to vector<64x64xf32>
    %cst_129 = arith.constant dense<0.000000e+00> : vector<64x32xf32>
    %149 = tpu.matmul %148, %140, %cst_129 {dimension_numbers = #tpu.dot_dimension_numbers<[1], [0], [0], [1], [0, 0, 1, 1], [], []>} : vector<64x64xf32>, vector<64x32xf32>, vector<64x32xf32> -> vector<64x32xf32>
    %150 = tpu.concatenate %140, %143, %146, %149 in 1 : vector<64x32xf32>, vector<64x32xf32>, vector<64x32xf32>, vector<64x32xf32> -> vector<64x128xf32>
    %c0_130 = arith.constant 0 : index
    %c0_131 = arith.constant 0 : index
    %151 = vector.load %arg8[%c0_130, %c0_131] : memref<128x4xf32, #tpu.memory_space<vmem>>, vector<128x4xf32>
    %cst_132 = arith.constant dense<0.000000e+00> : vector<64x4xf32>
    %152 = tpu.matmul %150, %151, %cst_132 {dimension_numbers = #tpu.dot_dimension_numbers<[1], [0], [0], [1], [0, 0, 1, 1], [], []>} : vector<64x128xf32>, vector<128x4xf32>, vector<64x4xf32> -> vector<64x4xf32>
    %c0_133 = arith.constant 0 : index
    %c0_134 = arith.constant 0 : index
    %153 = vector.load %arg9[%c0_133, %c0_134] : memref<1x1xf32, #tpu.memory_space<vmem>>, vector<1x1xf32>
    %154 = vector.broadcast %153 : vector<1x1xf32> to vector<64x4xf32>
    %155 = arith.addf %152, %154 : vector<64x4xf32>
    %cst_135 = arith.constant 0.000000e+00 : f32
    %156 = vector.broadcast %cst_135 : f32 to vector<64x4xf32>
    %157 = arith.subf %156, %155 : vector<64x4xf32>
    %158 = math.exp %157 : vector<64x4xf32>
    %cst_136 = arith.constant 1.000000e+00 : f32
    %159 = vector.broadcast %cst_136 : f32 to vector<64x4xf32>
    %160 = arith.addf %159, %158 : vector<64x4xf32>
    %161 = tpu.reciprocal %160 {approx = true} : vector<64x4xf32> -> vector<64x4xf32>
    %c0_137 = arith.constant 0 : index
    %c0_138 = arith.constant 0 : index
    %c0_139 = arith.constant 0 : index
    %162 = vector.load %arg13[%c0_137, %c0_138, %c0_139] : memref<1x64x4xf32, #tpu.memory_space<vmem>>, vector<1x64x4xf32>
    %163 = vector.shape_cast %162 : vector<1x64x4xf32> to vector<64x4xf32>
    %164 = vector.shape_cast %161 : vector<64x4xf32> to vector<1x64x4xf32>
    tpu.vector_store %arg13[%c0_137, %c0_138, %c0_139], %164 {strides = array<i32>} : memref<1x64x4xf32, #tpu.memory_space<vmem>>, vector<1x64x4xf32>,
    return
  }
  func.func @transform_0(%arg0: i32) -> (i32, i32, i32) {
    %c0_i32 = arith.constant 0 : i32
    %c0_i32_0 = arith.constant 0 : i32
    %c0_i32_1 = arith.constant 0 : i32
    return %arg0, %c0_i32, %c0_i32_0 : i32, i32, i32
  }
  func.func @transform_1(%arg0: i32) -> (i32, i32) {
    %c0_i32 = arith.constant 0 : i32
    %c0_i32_0 = arith.constant 0 : i32
    %c0_i32_1 = arith.constant 0 : i32
    return %c0_i32, %c0_i32_0 : i32, i32
  }
  func.func @transform_2(%arg0: i32) -> (i32, i32) {
    %c0_i32 = arith.constant 0 : i32
    %c0_i32_0 = arith.constant 0 : i32
    %c0_i32_1 = arith.constant 0 : i32
    return %c0_i32, %c0_i32_0 : i32, i32
  }
  func.func @transform_3(%arg0: i32) -> (i32, i32, i32) {
    %c0_i32 = arith.constant 0 : i32
    %c0_i32_0 = arith.constant 0 : i32
    %c0_i32_1 = arith.constant 0 : i32
    %c0_i32_2 = arith.constant 0 : i32
    return %c0_i32, %c0_i32_0, %c0_i32_1 : i32, i32, i32
  }
  func.func @transform_4(%arg0: i32) -> (i32, i32) {
    %c0_i32 = arith.constant 0 : i32
    %c0_i32_0 = arith.constant 0 : i32
    %c0_i32_1 = arith.constant 0 : i32
    return %c0_i32, %c0_i32_0 : i32, i32
  }
  func.func @transform_5(%arg0: i32) -> (i32, i32) {
    %c0_i32 = arith.constant 0 : i32
    %c0_i32_0 = arith.constant 0 : i32
    %c0_i32_1 = arith.constant 0 : i32
    return %c0_i32, %c0_i32_0 : i32, i32
  }
  func.func @transform_6(%arg0: i32) -> (i32, i32) {
    %c0_i32 = arith.constant 0 : i32
    %c0_i32_0 = arith.constant 0 : i32
    %c0_i32_1 = arith.constant 0 : i32
    return %c0_i32, %c0_i32_0 : i32, i32
  }
  func.func @transform_7(%arg0: i32) -> (i32, i32) {
    %c0_i32 = arith.constant 0 : i32
    %c0_i32_0 = arith.constant 0 : i32
    %c0_i32_1 = arith.constant 0 : i32
    return %c0_i32, %c0_i32_0 : i32, i32
  }
  func.func @transform_8(%arg0: i32) -> (i32, i32) {
    %c0_i32 = arith.constant 0 : i32
    %c0_i32_0 = arith.constant 0 : i32
    %c0_i32_1 = arith.constant 0 : i32
    return %c0_i32, %c0_i32_0 : i32, i32
  }
  func.func @transform_9(%arg0: i32) -> (i32, i32, i32) {
    %c0_i32 = arith.constant 0 : i32
    %c0_i32_0 = arith.constant 0 : i32
    %c0_i32_1 = arith.constant 0 : i32
    %c0_i32_2 = arith.constant 0 : i32
    return %c0_i32, %c0_i32_0, %c0_i32_1 : i32, i32, i32
  }
  func.func @transform_10(%arg0: i32) -> (i32, i32, i32) {
    %c0_i32 = arith.constant 0 : i32
    %c0_i32_0 = arith.constant 0 : i32
    %c0_i32_1 = arith.constant 0 : i32
    %c0_i32_2 = arith.constant 0 : i32
    return %c0_i32, %c0_i32_0, %c0_i32_1 : i32, i32, i32
  }
  func.func @transform_11(%arg0: i32) -> (i32, i32, i32) {
    %c0_i32 = arith.constant 0 : i32
    %c0_i32_0 = arith.constant 0 : i32
    %c0_i32_1 = arith.constant 0 : i32
    %c0_i32_2 = arith.constant 0 : i32
    return %c0_i32, %c0_i32_0, %c0_i32_1 : i32, i32, i32
  }
  func.func @transform_12(%arg0: i32) -> (i32, i32, i32) {
    %c0_i32 = arith.constant 0 : i32
    %c0_i32_0 = arith.constant 0 : i32
    %c0_i32_1 = arith.constant 0 : i32
    return %arg0, %c0_i32, %c0_i32_0 : i32, i32, i32
  }
}

</mosaic_0001>

<bundles_post_ra>
// kernel: autoencoder_forward.1
= control target key start
LH: loop header
LB: loop body
LE: loop exit
PB: predicated region body
PF: predicated region fallthrough
CT: control target
= control target key end

     0   :  { %s6851_s23 = smov 0   ;;  %s8079_s0 = inlined_call_operand.vmem [shape: f32[2,256,9], index: 0, kind: input, shape index: {}]   ;;  %s8080_s1 = inlined_call_operand.vmem [shape: f32[9,32], index: 1, kind: input, shape index: {}]   ;;  %s8081_s2 = inlined_call_operand.vmem [shape: f32[1,32], index: 2, kind: input, shape index: {}]   ;;  %s8082_s3 = inlined_call_operand.vmem [shape: f32[9,32,64], index: 3, kind: input, shape index: {}]   ;;  %s8083_s4 = inlined_call_operand.vmem [shape: f32[1,64], index: 4, kind: input, shape index: {}]   ;;  %s8084_s5 = inlined_call_operand.vmem [shape: f32[256,128], index: 5, kind: input, shape index: {}]   ;;  %s8085_s6 = inlined_call_operand.vmem [shape: f32[1,32], index: 6, kind: input, shape index: {}]   ;;  %s8086_s7 = inlined_call_operand.vmem [shape: f32[128,4], index: 7, kind: input, shape index: {}]   ;;  %s8087_s8 = inlined_call_operand.<no memory space> [shape: f32[1,1], index: 8, kind: input, shape index: {}]   ;;  %s8088_s9 = inlined_call_operand.vmem [shape: f32[3,16,16], index: 9, kind: input, shape index: {}]   ;;  %s8089_s10 = inlined_call_operand.vmem [shape: f32[4,64,16], index: 10, kind: input, shape index: {}]   ;;  %s8090_s11 = inlined_call_operand.vmem [shape: f32[3,64,64], index: 11, kind: input, shape index: {}]   ;;  %s8091_s12 = inlined_call_operand.vmem [shape: f32[2,64,4], index: 12, kind: output, shape index: {}]  }
   0x1   :  { %v17_v0 = vstv %s8087_s8 }
   0x2   :  { %18 = vst [vmem:[#allocation3] sm:$0x1] %v17_v0 }
   0x3 LB: > { %s5235_s24 = sadd.s32 4294967295, %s6774_s23   ;;  %p5239_p0 = scmp.ge.s32.totalorder %s6774_s23, 1  ;;  %s6774_s23 = sphi %s6851_s23, %s24_s23  }
   0x4   : > { %p364_p1 = scmp.lt.s32.totalorder %s6774_s23, 3 }
   0x6   : > { %p365_p2 = pnand %p5239_p0, %p364_p1 }
   0x7   : > { %v448_v1 = vld [vmem:[%s8080_s1] sm:$0xff] (!%p365_p2)  ;;  %v449_v2 = vld [vmem:[%s8080_s1 + $0x8] sm:$0x1] (!%p365_p2)  ;;  %vm554_vm0 = vcmask (!%p365_p2), 1040384   ;;  %p406_p3 = scmp.lt.s32.totalorder (!%p365_p2), %s5235_s24, 1  ;;  %vm6776_vm1 = vmmov (!%p365_p2), 1   ;;  %v851_v49 = vlaneseq (!%p365_p2) }
   0x8   : > { %368 = sbr.rel (%p365_p2) target bundleno = 2301 (0x8fd), region = 68  ;;  %v6324_v3 = vpack.c.bf16 (!%p365_p2), %v449_v2, %v448_v1  ;;  %vm6325_vm2 = vmpackc.low (!%p365_p2), %vm554_vm0, %vm6776_vm1  ;;  %vm457_vm3 = vcmask (!%p365_p2), 72704   ;;  %v5342_v36 = vld [vmem:[%s8082_s3 + $0x20] sm:$0xff] (!%p365_p2)  ;;  %v5343_v37 = vld [vmem:[%s8082_s3 + $0x28] sm:$0xff] (!%p365_p2)  ;;  %vm1439_vm4 = vcmask (!%p365_p2), 261120   ;;  %vm1441_vm5 = vcmask (!%p365_p2), 254976  }
   0x9   : > { %v6330_v38 = vpack.c.bf16 (!%p365_p2), %v5343_v37, %v5342_v36  ;;  %v6777_v39 = vmov (!%p365_p2), 0.0   ;;  %v5344_v40 = vld [vmem:[%s8082_s3 + $0x30] sm:$0xff] (!%p365_p2)  ;;  %v5345_v41 = vld [vmem:[%s8082_s3 + $0x38] sm:$0xff] (!%p365_p2)  ;;  %vm1446_vm6 = vcmask (!%p365_p2), 253952   ;;  %v1875_v44 = vld [vmem:[%s8082_s3] sm:$0xff] (!%p365_p2)  ;;  %v852_v55 = vshrl.u32 (!%p365_p2), %v851_v49, 7 }
   0xa   : > { %6326 = vmatprep.subr.msk.bf16.mxu0 (!%p365_p2), %vm6325_vm2, %v6324_v3  ;;  %1440 = vst.msk [vmem:[#allocation2] sm:$0xff] (!%p365_p2), %vm1439_vm4, %v6777_v39  ;;  %1444 = vst.msk [vmem:[#allocation2 + $0x90] sm:$0xff] (!%p365_p2), %vm1439_vm4, %v6777_v39  ;;  %v6334_v42 = vpack.c.bf16 (!%p365_p2), %v5345_v41, %v5344_v40  ;;  %v1876_v45 = vld [vmem:[%s8082_s3 + $0x8] sm:$0xff] (!%p365_p2)  ;;  %v6778_v47 = vmov (!%p365_p2), 1983009808   ;;  %vm1787_vm7 = vcmask (!%p365_p2), 1041409  }
   0xb   : > { %6329 = vmatpush3.bf16.msk.msra.mxu0 (!%p365_p2), %vm6325_vm2, %v6324_v3  ;;  %6542 = vmatprep.subr.bf16.mxu1 (!%p365_p2), %v6330_v38  ;;  %1442 = vst.msk [vmem:[#allocation2 + $0x8] sm:$0x3] (!%p365_p2), %vm1441_vm5, %v6777_v39  ;;  %1445 = vst.msk [vmem:[#allocation2 + $0x98] sm:$0x3] (!%p365_p2), %vm1441_vm5, %v6777_v39  ;;  %v6978_v46 = vpack.c.bf16 (!%p365_p2), %v1876_v45, %v1875_v44  ;;  %v849_v48 = vunpack.c.l.s4 (!%p365_p2), %v6778_v47  ;;  %v6984_v51 = vld [vmem:[%s8081_s2] ss:$0 sm:$0xff] (!%p365_p2) }
   0xc   : > { %6331 = vmatprep.subr.bf16.mxu0 (!%p365_p2), %v6330_v38  ;;  %6544 = vmatpush3.bf16.msra.mxu1 (!%p365_p2), %v6330_v38  ;;  %1447 = vst.msk [vmem:[#allocation2] sm:$0x1] (!%p365_p2), %vm1446_vm6, %v6777_v39  ;;  %1448 = vst.msk [vmem:[#allocation2 + $0x10] sm:$0x1] (!%p365_p2), %vm1446_vm6, %v6777_v39  ;;  %vm1789_vm8 = vcmask (!%p365_p2), 1042434   ;;  %vm1791_vm9 = vcmask (!%p365_p2), 1043459  }
   0xd   : > { %6543 = vmatprep.subr.bf16.mxu1 (!%p365_p2), %v6334_v42  ;;  %1449 = vst.msk [vmem:[#allocation2 + $0x20] sm:$0x1] (!%p365_p2), %vm1446_vm6, %v6777_v39  ;;  %1450 = vst.msk [vmem:[#allocation2 + $0x30] sm:$0x1] (!%p365_p2), %vm1446_vm6, %v6777_v39  ;;  %v850_v54 = vunpack.c.0.s8 (!%p365_p2), %v849_v48  ;;  %vm1793_vm10 = vcmask (!%p365_p2), 1044484   ;;  %vm1795_vm11 = vcmask (!%p365_p2), 1045509  }
   0xe   : > { %1451 = vst.msk [vmem:[#allocation2 + $0x40] sm:$0x1] (!%p365_p2), %vm1446_vm6, %v6777_v39  ;;  %1452 = vst.msk [vmem:[#allocation2 + $0x50] sm:$0x1] (!%p365_p2), %vm1446_vm6, %v6777_v39  ;;  %vm1797_vm12 = vcmask (!%p365_p2), 1046534   ;;  %vm1799_vm13 = vcmask (!%p365_p2), 1047559  }
   0xf   : > { %s8093_s24 = smov (!%p406_p3, %s5235_s24), 1  ;;  %1453 = vst.msk [vmem:[#allocation2 + $0x60] sm:$0x1] %vm1446_vm6, %v6777_v39  ;;  %1454 = vst.msk [vmem:[#allocation2 + $0x70] sm:$0x1] %vm1446_vm6, %v6777_v39  ;;  %v6990_v63 = vsub.s32 %v850_v54, %v852_v55  ;;  %vm3478_vm14 = vcmask 130048  }
  0x10   : > { %s5573_s28 = sshll.u32 %s8093_s24, 8  ;;  %6545 = vmatpush3.bf16.msra.mxu1 %v6334_v42  ;;  %1455 = vst.msk [vmem:[#allocation2 + $0x80] sm:$0x1] %vm1446_vm6, %v6777_v39  ;;  %1456 = vst.msk [vmem:[#allocation2 + $0x90] sm:$0x1] %vm1446_vm6, %v6777_v39  ;;  %vm3744_vm15 = vcmask 523264  }
  0x11   : > { %s6871_s13 = scalar_lea.vmem %s8079_s0, %s5573_s28  ;;  %1457 = vst.msk [vmem:[#allocation2 + $0x9] sm:$0x1] %vm1446_vm6, %v6777_v39  ;;  %1458 = vst.msk [vmem:[#allocation2 + $0x19] sm:$0x1] %vm1446_vm6, %v6777_v39  ;;  %6339 = vmatprep.subr.bf16.mxu1 %v6978_v46  ;;  %s6780_s16 = smov 32   ;;  %vm4991_vm0 = vcmask 785408  }
  0x12   : > { %v416_v4 = vld [vmem:[%s6871_s13] sm:$0xff]  ;;  %v417_v5 = vld [vmem:[%s6871_s13 + $0x8] sm:$0xff]  ;;  %v418_v6 = vld [vmem:[%s6871_s13 + $0x10] sm:$0xff]  ;;  %1459 = vst.msk [vmem:[#allocation2 + $0x29] sm:$0x1] %vm1446_vm6, %v6777_v39  ;;  %s6781_s17 = smov 96  }
  0x13   : > { %5883 = vmatprep.mubr.msk.f32.mxu0 %vm457_vm3, %v416_v4  ;;  %v419_v7 = vld [vmem:[%s6871_s13 + $0x18] sm:$0xff]  ;;  %v420_v8 = vld [vmem:[%s6871_s13 + $0x20] sm:$0xff]  ;;  %v421_v9 = vld [vmem:[%s6871_s13 + $0x28] sm:$0xff]  ;;  %1460 = vst.msk [vmem:[#allocation2 + $0x39] sm:$0x1] %vm1446_vm6, %v6777_v39  ;;  %vm5171_vm1 = vcmask 31744  }
  0x14   : > { %5884 = vmatmul.mubr.msk.f32.vlgmr.msra.gmra.mrb[0].mxu0 %vm457_vm3, %v417_v5  ;;  %v422_v10 = vld [vmem:[%s6871_s13 + $0x30] sm:$0xff]  ;;  %v423_v11 = vld [vmem:[%s6871_s13 + $0x38] sm:$0xff]  ;;  %v424_v12 = vld [vmem:[%s6871_s13 + $0x40] sm:$0xff]  ;;  %1461 = vst.msk [vmem:[#allocation2 + $0x49] sm:$0x1] %vm1446_vm6, %v6777_v39 }
  0x15   : > { %5886 = vmatprep.mubr.msk.f32.mxu0 %vm457_vm3, %v418_v6  ;;  %v425_v13 = vld [vmem:[%s6871_s13 + $0x48] sm:$0xff]  ;;  %v426_v14 = vld [vmem:[%s6871_s13 + $0x50] sm:$0xff]  ;;  %v427_v15 = vld [vmem:[%s6871_s13 + $0x58] sm:$0xff]  ;;  %6333 = vmatpush3.bf16.msra.mxu0 %v6330_v38  ;;  %1462 = vst.msk [vmem:[#allocation2 + $0x59] sm:$0x1] %vm1446_vm6, %v6777_v39 }
  0x16   : > { %v428_v16 = vld [vmem:[%s6871_s13 + $0x60] sm:$0xff]  ;;  %v429_v17 = vld [vmem:[%s6871_s13 + $0x68] sm:$0xff]  ;;  %v430_v18 = vld [vmem:[%s6871_s13 + $0x70] sm:$0xff]  ;;  %6335 = vmatprep.subr.bf16.mxu0 %v6334_v42  ;;  %1463 = vst.msk [vmem:[#allocation2 + $0x69] sm:$0x1] %vm1446_vm6, %v6777_v39 }
  0x17   : > { %v431_v19 = vld [vmem:[%s6871_s13 + $0x78] sm:$0xff]  ;;  %v432_v20 = vld [vmem:[%s6871_s13 + $0x80] sm:$0xff]  ;;  %v433_v21 = vld [vmem:[%s6871_s13 + $0x88] sm:$0xff]  ;;  %1464 = vst.msk [vmem:[#allocation2 + $0x79] sm:$0x1] %vm1446_vm6, %v6777_v39 }
  0x18   : > { %5887 = vmatmul.mubr.msk.f32.gmra.mrb[2].mxu0 %vm457_vm3, %v419_v7  ;;  %v434_v22 = vld [vmem:[%s6871_s13 + $0x90] sm:$0xff]  ;;  %v435_v23 = vld [vmem:[%s6871_s13 + $0x98] sm:$0xff]  ;;  %v436_v24 = vld [vmem:[%s6871_s13 + $0xa0] sm:$0xff]  ;;  %1465 = vst.msk [vmem:[#allocation2 + $0x89] sm:$0x1] %vm1446_vm6, %v6777_v39 }
  0x19   : > { %5889 = vmatprep.mubr.msk.f32.mxu0 %vm457_vm3, %v420_v8  ;;  %v437_v25 = vld [vmem:[%s6871_s13 + $0xa8] sm:$0xff]  ;;  %v438_v26 = vld [vmem:[%s6871_s13 + $0xb0] sm:$0xff]  ;;  %v439_v27 = vld [vmem:[%s6871_s13 + $0xb8] sm:$0xff]  ;;  %6337 = vmatpush3.bf16.msra.mxu0 %v6334_v42  ;;  %1466 = vst.msk [vmem:[#allocation2 + $0x99] sm:$0x1] %vm1446_vm6, %v6777_v39  ;;  %v6993_v8 = vsub.s32 0, %v852_v55 }
  0x1a   : > { %v440_v28 = vld [vmem:[%s6871_s13 + $0xc0] sm:$0xff]  ;;  %v441_v29 = vld [vmem:[%s6871_s13 + $0xc8] sm:$0xff]  ;;  %v442_v30 = vld [vmem:[%s6871_s13 + $0xd0] sm:$0xff] }
  0x1b   : > { %v443_v31 = vld [vmem:[%s6871_s13 + $0xd8] sm:$0xff]  ;;  %v444_v32 = vld [vmem:[%s6871_s13 + $0xe0] sm:$0xff]  ;;  %v445_v33 = vld [vmem:[%s6871_s13 + $0xe8] sm:$0xff] }
  0x1c   : > { %5890 = vmatmul.mubr.msk.f32.gmra.mrb[4].mxu0 %vm457_vm3, %v421_v9  ;;  %v446_v34 = vld [vmem:[%s6871_s13 + $0xf0] sm:$0xff]  ;;  %v447_v35 = vld [vmem:[%s6871_s13 + $0xf8] sm:$0xff]  ;;  %v1879_v43 = vld [vmem:[#allocation2 + $0x1] sm:$0xff]  ;;  %s6779_s13 = smov 64  }
  0x1d   : > { %5892 = vmatprep.mubr.msk.f32.mxu0 %vm457_vm3, %v422_v10 }
  0x20   : > { %5893 = vmatmul.mubr.msk.f32.gmra.mrb[6].mxu0 %vm457_vm3, %v423_v11 }
  0x21   : > { %5895 = vmatprep.mubr.msk.f32.mxu0 %vm457_vm3, %v424_v12 }
  0x24   : > { %5896 = vmatmul.mubr.msk.f32.gmra.mrb[8].mxu0 %vm457_vm3, %v425_v13 }
  0x25   : > { %5898 = vmatprep.mubr.msk.f32.mxu0 %vm457_vm3, %v426_v14 }
  0x28   : > { %5899 = vmatmul.mubr.msk.f32.gmra.mrb[10].mxu0 %vm457_vm3, %v427_v15 }
  0x29   : > { %5901 = vmatprep.mubr.msk.f32.mxu0 %vm457_vm3, %v428_v16 }
  0x2c   : > { %5902 = vmatmul.mubr.msk.f32.gmra.mrb[12].mxu0 %vm457_vm3, %v429_v17 }
  0x2d   : > { %5904 = vmatprep.mubr.msk.f32.mxu0 %vm457_vm3, %v430_v18 }
  0x30   : > { %5905 = vmatmul.mubr.msk.f32.gmra.mrb[14].mxu0 %vm457_vm3, %v431_v19 }
  0x31   : > { %5907 = vmatprep.mubr.msk.f32.mxu0 %vm457_vm3, %v432_v20 }
  0x34   : > { %5908 = vmatmul.mubr.msk.f32.gmra.mrb[16].mxu0 %vm457_vm3, %v433_v21 }
  0x35   : > { %5910 = vmatprep.mubr.msk.f32.mxu0 %vm457_vm3, %v434_v22 }
  0x38   : > { %5911 = vmatmul.mubr.msk.f32.gmra.mrb[18].mxu0 %vm457_vm3, %v435_v23 }
  0x39   : > { %5913 = vmatprep.mubr.msk.f32.mxu0 %vm457_vm3, %v436_v24 }
  0x3c   : > { %5914 = vmatmul.mubr.msk.f32.gmra.mrb[20].mxu0 %vm457_vm3, %v437_v25 }
  0x3d   : > { %5916 = vmatprep.mubr.msk.f32.mxu0 %vm457_vm3, %v438_v26 }
  0x40   : > { %5917 = vmatmul.mubr.msk.f32.gmra.mrb[22].mxu0 %vm457_vm3, %v439_v27 }
  0x41   : > { %5919 = vmatprep.mubr.msk.f32.mxu0 %vm457_vm3, %v440_v28 }
  0x44   : > { %5920 = vmatmul.mubr.msk.f32.gmra.mrb[24].mxu0 %vm457_vm3, %v441_v29 }
  0x45   : > { %5922 = vmatprep.mubr.msk.f32.mxu0 %vm457_vm3, %v442_v30 }
  0x48   : > { %5923 = vmatmul.mubr.msk.f32.gmra.mrb[26].mxu0 %vm457_vm3, %v443_v31 }
  0x49   : > { %5925 = vmatprep.mubr.msk.f32.mxu0 %vm457_vm3, %v444_v32 }
  0x4c   : > { %5926 = vmatmul.mubr.msk.f32.gmra.mrb[28].mxu0 %vm457_vm3, %v445_v33 }
  0x4d   : > { %5928 = vmatprep.mubr.msk.f32.mxu0 %vm457_vm3, %v446_v34 }
  0x50   : > { %5929 = vmatmul.mubr.msk.f32.gmra.mrb[30].mxu0 %vm457_vm3, %v447_v35 }
  0x51   : > { %5939 = vmatprep.mubr.msk.f32.mxu0 %vm1439_vm4, %v1879_v43 }
  0xe7   : > { %v5885_v50 = vpop.f32.mrb[0].mxu0 }
  0xe8   : > { %v624_v52 = vpop.f32.mrb[1].mxu0  ;;  %v630_v53 = vadd.f32 %v5885_v50, %v6984_v51 }
  0xe9   : > { %v625_v56 = vadd.f32 %v6984_v51, %v624_v52 }
  0xea   : > { %v784_v61 = vmax.f32 %v630_v53, 0.0 }
  0xeb   : > { %v5888_v57 = vpop.f32.mrb[2].mxu0  ;;  %v783_v0 = vmax.f32 %v625_v56, 0.0 }
  0xec   : > { %v640_v58 = vadd.f32 %v5888_v57, %v6984_v51  ;;  %v634_v59 = vpop.f32.mrb[3].mxu0 }
  0xed   : > { %v635_v60 = vadd.f32 %v6984_v51, %v634_v59 }
  0xee   : > { %v786_v62 = vmax.f32 %v640_v58, 0.0 }
  0xef   : > { %v785_v1 = vmax.f32 %v635_v60, 0.0  ;;  %v5891_v2 = vpop.f32.mrb[4].mxu0 }
  0xf0   : > { %v816_v3 = vmax.f32 %v784_v61, %v786_v62  ;;  %v644_v4 = vpop.f32.mrb[5].mxu0  ;;  %v650_v11 = vadd.f32 %v5891_v2, %v6984_v51 }
  0xf1   : > { %v815_v5 = vmax.f32 %v783_v0, %v785_v1  ;;  %v645_v12 = vadd.f32 %v6984_v51, %v644_v4 }
  0xf2   : > { %v864_v6 = vcombine.high %v816_v3, %v816_v3  ;;  %v871_v7 = vrot.slane %v816_v3, %v6990_v63  ;;  %v788_v35 = vmax.f32 %v650_v11, 0.0 }
  0xf3   : > { %v847_v9 = vcombine.high %v815_v5, %v815_v5  ;;  %v854_v10 = vrot.slane %v815_v5, %v6990_v63  ;;  %v5894_v13 = vpop.f32.mrb[6].mxu0  ;;  %v787_v40 = vmax.f32 %v645_v12, 0.0 }
  0xf4   : > { %v878_v14 = vrot.slane %v864_v6, %v6990_v63  ;;  %v879_v15 = vcombine.high %v871_v7, %v871_v7  ;;  %v5282_v16 = vrot.slane %v871_v7, 9  ;;  %v660_v17 = vadd.f32 %v5894_v13, %v6984_v51  ;;  %v654_v18 = vpop.f32.mrb[7].mxu0 }
  0xf5   : > { %v861_v19 = vrot.slane %v847_v9, %v6990_v63  ;;  %v862_v20 = vcombine.high %v854_v10, %v854_v10  ;;  %v5278_v21 = vrot.slane %v854_v10, 9  ;;  %v655_v22 = vadd.f32 %v6984_v51, %v654_v18 }
  0xf6   : > { %v880_v23 = vcombine.high %v878_v14, %v878_v14  ;;  %v5283_v24 = vrot.slane %v879_v15, 9  ;;  %v5284_v25 = vrot.slane %v878_v14, 9  ;;  %v1379_v26 = vmax.f32 %v871_v7, %v5282_v16 }
  0xf7   : > { %v863_v27 = vcombine.high %v861_v19, %v861_v19  ;;  %v5279_v28 = vrot.slane %v862_v20, 9  ;;  %v5280_v29 = vrot.slane %v861_v19, 9  ;;  %v1375_v30 = vmax.f32 %v854_v10, %v5278_v21  ;;  %v5897_v31 = vpop.f32.mrb[8].mxu0 }
  0xf8   : > { %v5285_v32 = vrot.slane %v880_v23, 9  ;;  %v1380_v33 = vmax.f32 %v879_v15, %v5283_v24  ;;  %v1381_v34 = vmax.f32 %v878_v14, %v5284_v25  ;;  %v664_v36 = vpop.f32.mrb[9].mxu0  ;;  %v1550_v42 = vrot.slane %v1379_v26, %v6993_v8 }
  0xf9   : > { %v5281_v37 = vrot.slane %v863_v27, 9  ;;  %v1376_v38 = vmax.f32 %v862_v20, %v5279_v28  ;;  %v1377_v39 = vmax.f32 %v861_v19, %v5280_v29  ;;  %v1534_v43 = vrot.slane %v1375_v30, %v6993_v8 }
  0xfa   : > { %v1382_v41 = vmax.f32 %v880_v23, %v5285_v32  ;;  %v790_v44 = vmax.f32 %v660_v17, 0.0  ;;  %v789_v49 = vmax.f32 %v655_v22, 0.0  ;;  %v1554_v52 = vrot.slane %v1380_v33, %v6993_v8 }
  0xfb   : > { %v1378_v45 = vmax.f32 %v863_v27, %v5281_v37  ;;  %v1538_v47 = vrot.slane %v1376_v38, %v6993_v8  ;;  %v1542_v48 = vrot.slane %v1377_v39, %v6993_v8  ;;  %v5900_v50 = vpop.f32.mrb[10].mxu0  ;;  %v1558_v53 = vrot.slane %v1381_v34, %v6993_v8 }
  0xfc   : > { %v1562_v54 = vrot.slane %v1382_v41, %v6993_v8  ;;  %v818_v55 = vmax.f32 %v788_v35, %v790_v44  ;;  %v674_v56 = vpop.f32.mrb[11].mxu0  ;;  %v817_v59 = vmax.f32 %v787_v40, %v789_v49  ;;  %v670_v60 = vadd.f32 %v5897_v31, %v6984_v51 }
  0xfd   : > { %v1546_v57 = vrot.slane %v1378_v45, %v6993_v8  ;;  %v1788_v58 = vsel %vm1787_vm7, %v1538_v47, %v1534_v43  ;;  %v7015_v1 = vadd.f32 %v6984_v51, %v664_v36  ;;  %v680_v5 = vadd.f32 %v5900_v50, %v6984_v51 }
  0xfe   : > { %v1790_v61 = vsel %vm1789_vm8, %v1542_v48, %v1788_v58  ;;  %v898_v62 = vcombine.high %v818_v55, %v818_v55  ;;  %v905_v0 = vrot.slane %v818_v55, %v6990_v63  ;;  %v881_v3 = vcombine.high %v817_v59, %v817_v59 }
  0xff   : > { %v1792_v2 = vsel %vm1791_vm9, %v1546_v57, %v1790_v61  ;;  %v888_v4 = vrot.slane %v817_v59, %v6990_v63  ;;  %v5903_v6 = vpop.f32.mrb[12].mxu0  ;;  %v792_v29 = vmax.f32 %v670_v60, 0.0  ;;  %v791_v38 = vmax.f32 %v7015_v1, 0.0 }
 0x100   : > { %v1794_v7 = vsel %vm1793_vm10, %v1550_v42, %v1792_v2  ;;  %v912_v9 = vrot.slane %v898_v62, %v6990_v63  ;;  %v913_v10 = vcombine.high %v905_v0, %v905_v0  ;;  %v5290_v11 = vrot.slane %v905_v0, 9  ;;  %v684_v12 = vpop.f32.mrb[13].mxu0 }
 0x101   : > { %v1796_v13 = vsel %vm1795_vm11, %v1554_v52, %v1794_v7  ;;  %v895_v14 = vrot.slane %v881_v3, %v6990_v63  ;;  %v896_v15 = vcombine.high %v888_v4, %v888_v4  ;;  %v5286_v16 = vrot.slane %v888_v4, 9 }
 0x102   : > { %v1798_v17 = vsel %vm1797_vm12, %v1558_v53, %v1796_v13  ;;  %v914_v18 = vcombine.high %v912_v9, %v912_v9  ;;  %v5291_v19 = vrot.slane %v913_v10, 9  ;;  %v5292_v20 = vrot.slane %v912_v9, 9 }
 0x103   : > { %v1800_v21 = vsel %vm1799_vm13, %v1562_v54, %v1798_v17  ;;  %v1387_v22 = vmax.f32 %v905_v0, %v5290_v11  ;;  %v897_v23 = vcombine.high %v895_v14, %v895_v14  ;;  %v5287_v24 = vrot.slane %v896_v15, 9  ;;  %v5906_v25 = vpop.f32.mrb[14].mxu0  ;;  %v1878_v17 = vld [vmem:[%s8082_s3 + $0x18] sm:$0xff] }
 0x104   : > { %1859 = vst.msk [vmem:[#allocation2 + $0x11] sm:$0xff] %vm1439_vm4, %v1800_v21  ;;  %v5293_v26 = vrot.slane %v914_v18, 9  ;;  %v1388_v27 = vmax.f32 %v913_v10, %v5291_v19  ;;  %v5288_v28 = vrot.slane %v895_v14, 9  ;;  %v694_v30 = vpop.f32.mrb[15].mxu0  ;;  %v1389_v31 = vmax.f32 %v912_v9, %v5292_v20 }
 0x105   : > { %v5289_v32 = vrot.slane %v897_v23, 9  ;;  %v1383_v33 = vmax.f32 %v888_v4, %v5286_v16  ;;  %v1384_v34 = vmax.f32 %v896_v15, %v5287_v24  ;;  %v1582_v36 = vrot.slane %v1387_v22, %v6993_v8  ;;  %v1877_v16 = vld [vmem:[%s8082_s3 + $0x10] sm:$0xff] }
 0x106   : > { %v1390_v35 = vmax.f32 %v914_v18, %v5293_v26  ;;  %v1385_v37 = vmax.f32 %v895_v14, %v5288_v28  ;;  %v794_v42 = vmax.f32 %v680_v5, 0.0  ;;  %v1586_v44 = vrot.slane %v1388_v27, %v6993_v8 }
 0x107   : > { %v1386_v39 = vmax.f32 %v897_v23, %v5289_v32  ;;  %v1566_v40 = vrot.slane %v1383_v33, %v6993_v8  ;;  %v1570_v41 = vrot.slane %v1384_v34, %v6993_v8  ;;  %v7031_v43 = vpop.f32.mrb[16].mxu0  ;;  %v675_v47 = vadd.f32 %v6984_v51, %v674_v56 }
 0x108   : > { %v1574_v45 = vrot.slane %v1385_v37, %v6993_v8  ;;  %v690_v48 = vadd.f32 %v5903_v6, %v6984_v51  ;;  %v7037_v49 = vpop.f32.mrb[17].mxu0  ;;  %v1590_v50 = vrot.slane %v1389_v31, %v6993_v8  ;;  %v820_v54 = vmax.f32 %v792_v29, %v794_v42 }
 0x109   : > { %v1578_v52 = vrot.slane %v1386_v39, %v6993_v8  ;;  %v1801_v53 = vsel %vm1787_vm7, %v1570_v41, %v1566_v40  ;;  %v1594_v55 = vrot.slane %v1390_v35, %v6993_v8  ;;  %v793_v58 = vmax.f32 %v675_v47, 0.0 }
 0x10a   : > { %v1802_v57 = vsel %vm1789_vm8, %v1574_v45, %v1801_v53  ;;  %v700_v59 = vadd.f32 %v5906_v25, %v6984_v51  ;;  %v932_v60 = vcombine.high %v820_v54, %v820_v54  ;;  %v939_v61 = vrot.slane %v820_v54, %v6990_v63 }
 0x10b   : > { %v1803_v56 = vsel %vm1791_vm9, %v1578_v52, %v1802_v57  ;;  %v685_v62 = vadd.f32 %v6984_v51, %v684_v12  ;;  %v7048_v0 = vpop.f32.mrb[18].mxu0  ;;  %v7050_v1 = vld [vmem:[#allocation2 + $0x11] sm:$0xff]  ;;  %v819_v3 = vmax.f32 %v791_v38, %v793_v58  ;;  %v796_v4 = vmax.f32 %v690_v48, 0.0 }
 0x10c   : > { %v1804_v2 = vsel %vm1793_vm10, %v1582_v36, %v1803_v56  ;;  %v798_v5 = vmax.f32 %v700_v59, 0.0  ;;  %v7053_v6 = vpop.f32.mrb[19].mxu0  ;;  %5940 = vmatmul.mubr.msk.f32.vlgmr.msra.gmra.mrb[32].mxu0 %vm1439_vm4, %v7050_v1  ;;  %v946_v9 = vrot.slane %v932_v60, %v6990_v63  ;;  %v947_v10 = vcombine.high %v939_v61, %v939_v61 }
 0x10d   : > { %v1805_v7 = vsel %vm1795_vm11, %v1586_v44, %v1804_v2  ;;  %v5298_v11 = vrot.slane %v939_v61, 9  ;;  %v915_v13 = vcombine.high %v819_v3, %v819_v3  ;;  %v922_v14 = vrot.slane %v819_v3, %v6990_v63 }
 0x10e   : > { %v1806_v12 = vsel %vm1797_vm12, %v1590_v50, %v1805_v7  ;;  %v822_v15 = vmax.f32 %v796_v4, %v798_v5  ;;  %v948_v19 = vcombine.high %v946_v9, %v946_v9  ;;  %v5299_v20 = vrot.slane %v947_v10, 9 }
 0x10f   : > { %v1807_v18 = vsel %vm1799_vm13, %v1594_v55, %v1806_v12  ;;  %v5300_v21 = vrot.slane %v946_v9, 9  ;;  %v7068_v22 = vpop.f32.mrb[20].mxu0  ;;  %v929_v23 = vrot.slane %v915_v13, %v6990_v63  ;;  %v930_v24 = vcombine.high %v922_v14, %v922_v14 }
 0x110   : > { %1860 = vst.msk [vmem:[#allocation2 + $0x21] sm:$0xff] %vm1439_vm4, %v1807_v18  ;;  %v5294_v25 = vrot.slane %v922_v14, 9  ;;  %v7072_v26 = vpop.f32.mrb[21].mxu0  ;;  %v5301_v27 = vrot.slane %v948_v19, 9  ;;  %v966_v28 = vcombine.high %v822_v15, %v822_v15  ;;  %v695_v29 = vadd.f32 %v6984_v51, %v694_v30 }
 0x111   : > { %v7075_v31 = vpack.c.bf16 %v1878_v17, %v1877_v16  ;;  %v931_v32 = vcombine.high %v929_v23, %v929_v23  ;;  %v5295_v33 = vrot.slane %v930_v24, 9  ;;  %v5296_v34 = vrot.slane %v929_v23, 9 }
 0x112   : > { %v795_v35 = vmax.f32 %v685_v62, 0.0  ;;  %v1395_v36 = vmax.f32 %v939_v61, %v5298_v11  ;;  %v1396_v37 = vmax.f32 %v947_v10, %v5299_v20  ;;  %v1397_v38 = vmax.f32 %v946_v9, %v5300_v21 }
 0x113   : > { %v1391_v39 = vmax.f32 %v922_v14, %v5294_v25  ;;  %v7077_v40 = vpop.f32.mrb[22].mxu0  ;;  %v5297_v41 = vrot.slane %v931_v32, 9  ;;  %v1392_v42 = vmax.f32 %v930_v24, %v5295_v33  ;;  %v1393_v44 = vmax.f32 %v929_v23, %v5296_v34 }
 0x114   : > { %v973_v45 = vrot.slane %v822_v15, %v6990_v63  ;;  %v7080_v47 = vpop.f32.mrb[23].mxu0  ;;  %v1398_v30 = vmax.f32 %v948_v19, %v5301_v27  ;;  %v980_v50 = vrot.slane %v966_v28, %v6990_v63  ;;  %v797_v52 = vmax.f32 %v695_v29, 0.0 }
 0x115   : > { %v1598_v48 = vrot.slane %v1391_v39, %v6993_v8  ;;  %v1394_v53 = vmax.f32 %v931_v32, %v5297_v41  ;;  %v1602_v54 = vrot.slane %v1392_v42, %v6993_v8  ;;  %v1606_v55 = vrot.slane %v1393_v44, %v6993_v8 }
 0x116   : > { %v981_v57 = vcombine.high %v973_v45, %v973_v45  ;;  %v982_v58 = vcombine.high %v980_v50, %v980_v50  ;;  %v5306_v59 = vrot.slane %v973_v45, 9  ;;  %v5308_v56 = vrot.slane %v980_v50, 9 }
 0x117   : > { %v821_v60 = vmax.f32 %v795_v35, %v797_v52  ;;  %v7086_v61 = vld [vmem:[#allocation2 + $0x21] sm:$0xff]  ;;  %v7088_v62 = vpop.f32.mrb[24].mxu0  ;;  %v1614_v2 = vrot.slane %v1395_v36, %v6993_v8  ;;  %v1610_v3 = vrot.slane %v1394_v53, %v6993_v8  ;;  %v1808_v4 = vsel %vm1787_vm7, %v1602_v54, %v1598_v48 }
 0x118   : > { %v5307_v5 = vrot.slane %v981_v57, 9  ;;  %5942 = vmatprep.mubr.msk.f32.mxu0 %vm1439_vm4, %v7086_v61  ;;  %v7095_v7 = vpop.f32.mrb[25].mxu0  ;;  %v1618_v9 = vrot.slane %v1396_v37, %v6993_v8  ;;  %v1809_v10 = vsel %vm1789_vm8, %v1606_v55, %v1808_v4  ;;  %v5309_v11 = vrot.slane %v982_v58, 9 }
 0x119   : > { %v7099_v12 = vmax.f32 %v973_v45, %v5306_v59  ;;  %v1622_v13 = vrot.slane %v1397_v38, %v6993_v8  ;;  %v1810_v14 = vsel %vm1791_vm9, %v1610_v3, %v1809_v10  ;;  %v949_v15 = vcombine.high %v821_v60, %v821_v60 }
 0x11a   : > { %v956_v16 = vrot.slane %v821_v60, %v6990_v63  ;;  %v1626_v17 = vrot.slane %v1398_v30, %v6993_v8  ;;  %v1811_v18 = vsel %vm1793_vm10, %v1614_v2, %v1810_v14  ;;  %v7106_v19 = vmax.f32 %v980_v50, %v5308_v56 }
 0x11b   : > { %v710_v20 = vadd.f32 %v7031_v43, %v6984_v51  ;;  %v7110_v21 = vpop.f32.mrb[26].mxu0  ;;  %v1812_v23 = vsel %vm1795_vm11, %v1618_v9, %v1811_v18  ;;  %v1404_v24 = vmax.f32 %v981_v57, %v5307_v5  ;;  %v963_v25 = vrot.slane %v949_v15, %v6990_v63 }
 0x11c   : > { %v964_v27 = vcombine.high %v956_v16, %v956_v16  ;;  %v7114_v28 = vpop.f32.mrb[27].mxu0  ;;  %v1813_v29 = vsel %vm1797_vm12, %v1622_v13, %v1812_v23  ;;  %v1406_v32 = vmax.f32 %v982_v58, %v5309_v11  ;;  %v1646_v33 = vrot.slane %v7099_v12, %v6993_v8 }
 0x11d   : > { %v5302_v34 = vrot.slane %v956_v16, 9  ;;  %v1814_v35 = vsel %vm1799_vm13, %v1626_v17, %v1813_v29  ;;  %v965_v43 = vcombine.high %v963_v25, %v963_v25  ;;  %v5304_v37 = vrot.slane %v963_v25, 9 }
 0x11e   : > { %v5303_v36 = vrot.slane %v964_v27, 9  ;;  %1861 = vst.msk [vmem:[#allocation2 + $0x31] sm:$0xff] %vm1439_vm4, %v1814_v35  ;;  %v705_v39 = vadd.f32 %v6984_v51, %v7037_v49  ;;  %v720_v41 = vadd.f32 %v7048_v0, %v6984_v51  ;;  %v715_v42 = vadd.f32 %v6984_v51, %v7053_v6 }
 0x11f   : > { %v1399_v38 = vmax.f32 %v956_v16, %v5302_v34  ;;  %v7127_v44 = vpop.f32.mrb[28].mxu0  ;;  %v5305_v45 = vrot.slane %v965_v43, 9  ;;  %v1401_v48 = vmax.f32 %v963_v25, %v5304_v37  ;;  %v7131_v50 = vadd.f32 %v7068_v22, %v6984_v51 }
 0x120   : > { %v1400_v30 = vmax.f32 %v964_v27, %v5303_v36  ;;  %v7133_v52 = vpop.f32.mrb[29].mxu0  ;;  %v800_v53 = vmax.f32 %v710_v20, 0.0  ;;  %v799_v54 = vmax.f32 %v705_v39, 0.0  ;;  %v802_v49 = vmax.f32 %v720_v41, 0.0 }
 0x121   : > { %v801_v55 = vmax.f32 %v715_v42, 0.0  ;;  %v1402_v57 = vmax.f32 %v965_v43, %v5305_v45  ;;  %v1630_v0 = vrot.slane %v1399_v38, %v6993_v8  ;;  %v1638_v58 = vrot.slane %v1401_v48, %v6993_v8 }
 0x122   : > { %v1634_v6 = vrot.slane %v1400_v30, %v6993_v8  ;;  %v1650_v59 = vrot.slane %v1404_v24, %v6993_v8  ;;  %v1654_v56 = vrot.slane %v7106_v19, %v6993_v8  ;;  %v824_v22 = vmax.f32 %v800_v53, %v802_v49 }
 0x123   : > { %v823_v60 = vmax.f32 %v799_v54, %v801_v55  ;;  %v7141_v2 = vpop.f32.mrb[30].mxu0  ;;  %v1658_v3 = vrot.slane %v1406_v32, %v6993_v8  ;;  %v1642_v4 = vrot.slane %v1402_v57, %v6993_v8  ;;  %v804_v9 = vmax.f32 %v7131_v50, 0.0 }
 0x124   : > { %v1815_v5 = vsel %vm1787_vm7, %v1634_v6, %v1630_v0  ;;  %v7147_v10 = vpop.f32.mrb[31].mxu0  ;;  %v1000_v12 = vcombine.high %v824_v22, %v824_v22  ;;  %v1007_v13 = vrot.slane %v824_v22, %v6990_v63  ;;  %v725_v17 = vadd.f32 %v6984_v51, %v7072_v26 }
 0x125   : > { %v1816_v11 = vsel %vm1789_vm8, %v1638_v58, %v1815_v5  ;;  %v983_v14 = vcombine.high %v823_v60, %v823_v60  ;;  %v990_v16 = vrot.slane %v823_v60, %v6990_v63  ;;  %v740_v18 = vadd.f32 %v7077_v40, %v6984_v51  ;;  %v7157_v19 = vld [vmem:[#allocation2 + $0x31] sm:$0xff] }
 0x126   : > { %v1817_v15 = vsel %vm1791_vm9, %v1642_v4, %v1816_v11  ;;  %v1014_v23 = vrot.slane %v1000_v12, %v6990_v63  ;;  %v1015_v24 = vcombine.high %v1007_v13, %v1007_v13  ;;  %v5314_v25 = vrot.slane %v1007_v13, 9  ;;  %5943 = vmatmul.mubr.msk.f32.gmra.mrb[34].mxu0 %vm1439_vm4, %v7157_v19 }
 0x127   : > { %v1818_v20 = vsel %vm1793_vm10, %v1646_v33, %v1817_v15  ;;  %v997_v29 = vrot.slane %v983_v14, %v6990_v63  ;;  %v998_v32 = vcombine.high %v990_v16, %v990_v16  ;;  %v5310_v26 = vrot.slane %v990_v16, 9 }
 0x128   : > { %v1819_v27 = vsel %vm1795_vm11, %v1650_v59, %v1818_v20  ;;  %v1016_v40 = vcombine.high %v1014_v23, %v1014_v23  ;;  %v5315_v35 = vrot.slane %v1015_v24, 9  ;;  %v5316_v43 = vrot.slane %v1014_v23, 9 }
 0x129   : > { %v1820_v34 = vsel %vm1797_vm12, %v1654_v56, %v1819_v27  ;;  %v999_v36 = vcombine.high %v997_v29, %v997_v29  ;;  %v5311_v37 = vrot.slane %v998_v32, 9  ;;  %v806_v38 = vmax.f32 %v740_v18, 0.0  ;;  %v5362_v27 = vld [vmem:[%s8082_s3 + $0x40] sm:$0xff] }
 0x12a   : > { %v1821_v33 = vsel %vm1799_vm13, %v1658_v3, %v1820_v34  ;;  %v5317_v39 = vrot.slane %v1016_v40, 9  ;;  %v1411_v41 = vmax.f32 %v1007_v13, %v5314_v25  ;;  %v5312_v42 = vrot.slane %v997_v29, 9 }
 0x12b   : > { %1862 = vst.msk [vmem:[#allocation2 + $0x41] sm:$0xff] %vm1439_vm4, %v1821_v33  ;;  %v735_v45 = vadd.f32 %v6984_v51, %v7080_v47  ;;  %v5313_v30 = vrot.slane %v999_v36, 9  ;;  %v1407_v48 = vmax.f32 %v990_v16, %v5310_v26  ;;  %v1408_v50 = vmax.f32 %v998_v32, %v5311_v37 }
 0x12c   : > { %v7172_v53 = vadd.f32 %v7088_v62, %v6984_v51  ;;  %v1412_v54 = vmax.f32 %v1015_v24, %v5315_v35  ;;  %v1413_v49 = vmax.f32 %v1014_v23, %v5316_v43  ;;  %v1409_v55 = vmax.f32 %v997_v29, %v5312_v42  ;;  %v5363_v29 = vld [vmem:[%s8082_s3 + $0x48] sm:$0xff] }
 0x12d   : > { %v803_v57 = vmax.f32 %v725_v17, 0.0  ;;  %v1410_v0 = vmax.f32 %v999_v36, %v5313_v30  ;;  %v1662_v6 = vrot.slane %v1407_v48, %v6993_v8  ;;  %v1666_v58 = vrot.slane %v1408_v50, %v6993_v8 }
 0x12e   : > { %v826_v59 = vmax.f32 %v804_v9, %v806_v38  ;;  %v1414_v56 = vmax.f32 %v1016_v40, %v5317_v39  ;;  %v1678_v47 = vrot.slane %v1411_v41, %v6993_v8  ;;  %v1670_v22 = vrot.slane %v1409_v55, %v6993_v8 }
 0x12f   : > { %v805_v60 = vmax.f32 %v735_v45, 0.0  ;;  %v1674_v3 = vrot.slane %v1410_v0, %v6993_v8  ;;  %v1822_v62 = vsel %vm1787_vm7, %v1666_v58, %v1662_v6  ;;  %v1682_v11 = vrot.slane %v1412_v54, %v6993_v8 }
 0x130   : > { %v1034_v4 = vcombine.high %v826_v59, %v826_v59  ;;  %v1041_v5 = vrot.slane %v826_v59, %v6990_v63  ;;  %v1686_v12 = vrot.slane %v1413_v49, %v6993_v8  ;;  %v1823_v13 = vsel %vm1789_vm8, %v1670_v22, %v1822_v62 }
 0x131   : > { %v825_v9 = vmax.f32 %v803_v57, %v805_v60  ;;  %v1824_v14 = vsel %vm1791_vm9, %v1674_v3, %v1823_v13  ;;  %v1690_v20 = vrot.slane %v1414_v56, %v6993_v8  ;;  %v745_v40 = vadd.f32 %v6984_v51, %v7095_v7 }
 0x132   : > { %v1048_v15 = vrot.slane %v1034_v4, %v6990_v63  ;;  %v1049_v16 = vcombine.high %v1041_v5, %v1041_v5  ;;  %v5322_v17 = vrot.slane %v1041_v5, 9  ;;  %v7186_v18 = vld [vmem:[#allocation2 + $0x41] sm:$0xff]  ;;  %v1825_v23 = vsel %vm1793_vm10, %v1678_v47, %v1824_v14 }
 0x133   : > { %v1017_v24 = vcombine.high %v825_v9, %v825_v9  ;;  %v1024_v25 = vrot.slane %v825_v9, %v6990_v63  ;;  %5945 = vmatprep.mubr.msk.f32.mxu1 %vm1439_vm4, %v7186_v18  ;;  %v1826_v32 = vsel %vm1795_vm11, %v1682_v11, %v1825_v23  ;;  %v760_v36 = vadd.f32 %v7110_v21, %v6984_v51 }
 0x134   : > { %v1050_v26 = vcombine.high %v1048_v15, %v1048_v15  ;;  %v5323_v34 = vrot.slane %v1049_v16, 9  ;;  %v1827_v35 = vsel %vm1797_vm12, %v1686_v12, %v1826_v32  ;;  %v5324_v38 = vrot.slane %v1048_v15, 9 }
 0x135   : > { %v1031_v43 = vrot.slane %v1017_v24, %v6990_v63  ;;  %v1032_v33 = vcombine.high %v1024_v25, %v1024_v25  ;;  %v1828_v37 = vsel %vm1799_vm13, %v1690_v20, %v1827_v35  ;;  %v1419_v39 = vmax.f32 %v1041_v5, %v5322_v17 }
 0x136   : > { %v7207_v41 = vpack.c.bf16 %v5363_v29, %v5362_v27  ;;  %1863 = vst.msk [vmem:[#allocation2 + $0x51] sm:$0xff] %vm1439_vm4, %v1828_v37  ;;  %v5318_v45 = vrot.slane %v1024_v25, 9  ;;  %v808_v7 = vmax.f32 %v7172_v53, 0.0  ;;  %v5325_v48 = vrot.slane %v1050_v26, 9 }
 0x137   : > { %v1033_v42 = vcombine.high %v1031_v43, %v1031_v43  ;;  %v5319_v30 = vrot.slane %v1032_v33, 9  ;;  %v1420_v50 = vmax.f32 %v1049_v16, %v5323_v34  ;;  %v5320_v54 = vrot.slane %v1031_v43, 9 }
 0x138   : > { %v807_v49 = vmax.f32 %v745_v40, 0.0  ;;  %v1415_v57 = vmax.f32 %v1024_v25, %v5318_v45  ;;  %v810_v0 = vmax.f32 %v760_v36, 0.0  ;;  %v1421_v6 = vmax.f32 %v1048_v15, %v5324_v38 }
 0x139   : > { %v5321_v55 = vrot.slane %v1033_v42, 9  ;;  %v1416_v21 = vmax.f32 %v1032_v33, %v5319_v30  ;;  %v1710_v58 = vrot.slane %v1419_v39, %v6993_v8  ;;  %v1417_v59 = vmax.f32 %v1031_v43, %v5320_v54 }
 0x13a   : > { %v755_v56 = vadd.f32 %v6984_v51, %v7114_v28  ;;  %v1694_v22 = vrot.slane %v1415_v57, %v6993_v8  ;;  %v828_v60 = vmax.f32 %v808_v7, %v810_v0  ;;  %v1422_v3 = vmax.f32 %v1050_v26, %v5325_v48 }
 0x13b   : > { %v1418_v47 = vmax.f32 %v1033_v42, %v5321_v55  ;;  %v1698_v53 = vrot.slane %v1416_v21, %v6993_v8  ;;  %v1702_v62 = vrot.slane %v1417_v59, %v6993_v8  ;;  %v770_v5 = vadd.f32 %v7127_v44, %v6984_v51 }
 0x13c   : > { %v809_v4 = vmax.f32 %v755_v56, 0.0  ;;  %v1068_v13 = vcombine.high %v828_v60, %v828_v60  ;;  %v1075_v28 = vrot.slane %v828_v60, %v6990_v63  ;;  %v1714_v9 = vrot.slane %v1420_v50, %v6993_v8 }
 0x13d   : > { %v1706_v11 = vrot.slane %v1418_v47, %v6993_v8  ;;  %v1829_v12 = vsel %vm1787_vm7, %v1698_v53, %v1694_v22  ;;  %v7224_v16 = vld [vmem:[#allocation2 + $0x51] sm:$0xff]  ;;  %v780_v17 = vadd.f32 %v7141_v2, %v6984_v51  ;;  %v1718_v20 = vrot.slane %v1421_v6, %v6993_v8 }
 0x13e   : > { %v1830_v14 = vsel %vm1789_vm8, %v1702_v62, %v1829_v12  ;;  %v827_v15 = vmax.f32 %v807_v49, %v809_v4  ;;  %v1082_v23 = vrot.slane %v1068_v13, %v6990_v63  ;;  %v1083_v24 = vcombine.high %v1075_v28, %v1075_v28  ;;  %5946 = vmatmul.mubr.msk.f32.vlgmr.msra.gmra.mrb[0].mxu1 %vm1439_vm4, %v7224_v16 }
 0x13f   : > { %v1831_v44 = vsel %vm1791_vm9, %v1706_v11, %v1830_v14  ;;  %v1722_v25 = vrot.slane %v1422_v3, %v6993_v8  ;;  %6341 = vmatpush3.bf16.msra.mxu1 %v6978_v46  ;;  %v812_v34 = vmax.f32 %v770_v5, 0.0  ;;  %v765_v40 = vadd.f32 %v6984_v51, %v7133_v52 }
 0x140   : > { %v1832_v27 = vsel %vm1793_vm10, %v1710_v58, %v1831_v44  ;;  %v1051_v29 = vcombine.high %v827_v15, %v827_v15  ;;  %v1058_v32 = vrot.slane %v827_v15, %v6990_v63  ;;  %v1084_v26 = vcombine.high %v1082_v23, %v1082_v23  ;;  %6343 = vmatprep.subr.bf16.mxu1 %v7075_v31 }
 0x141   : > { %v1833_v2 = vsel %vm1795_vm11, %v1714_v9, %v1832_v27  ;;  %v814_v36 = vmax.f32 %v780_v17, 0.0  ;;  %v5330_v38 = vrot.slane %v1075_v28, 9  ;;  %v5331_v39 = vrot.slane %v1083_v24, 9 }
 0x142   : > { %v1834_v35 = vsel %vm1797_vm12, %v1718_v20, %v1833_v2  ;;  %v1065_v43 = vrot.slane %v1051_v29, %v6990_v63  ;;  %v1066_v33 = vcombine.high %v1058_v32, %v1058_v32  ;;  %v5326_v42 = vrot.slane %v1058_v32, 9 }
 0x143   : > { %v1835_v37 = vsel %vm1799_vm13, %v1722_v25, %v1834_v35  ;;  %6345 = vmatpush3.bf16.msra.mxu1 %v7075_v31  ;;  %v5332_v30 = vrot.slane %v1082_v23, 9  ;;  %v5333_v7 = vrot.slane %v1084_v26, 9  ;;  %v811_v48 = vmax.f32 %v765_v40, 0.0 }
 0x144   : > { %1864 = vst.msk [vmem:[#allocation2 + $0x61] sm:$0xff] %vm1439_vm4, %v1835_v37  ;;  %v1067_v46 = vcombine.high %v1065_v43, %v1065_v43  ;;  %v5327_v45 = vrot.slane %v1066_v33, 9  ;;  %v5328_v52 = vrot.slane %v1065_v43, 9  ;;  %6347 = vmatprep.subr.bf16.mxu1 %v7207_v41  ;;  %v1423_v54 = vmax.f32 %v1058_v32, %v5326_v42 }
 0x145   : > { %v830_v55 = vmax.f32 %v812_v34, %v814_v36  ;;  %v1427_v57 = vmax.f32 %v1075_v28, %v5330_v38  ;;  %v1428_v21 = vmax.f32 %v1083_v24, %v5331_v39  ;;  %v775_v6 = vadd.f32 %v6984_v51, %v7147_v10 }
 0x146   : > { %v5329_v50 = vrot.slane %v1067_v46, 9  ;;  %v1424_v49 = vmax.f32 %v1066_v33, %v5327_v45  ;;  %v1425_v0 = vmax.f32 %v1065_v43, %v5328_v52  ;;  %v1726_v59 = vrot.slane %v1423_v54, %v6993_v8 }
 0x147   : > { %v1102_v56 = vcombine.high %v830_v55, %v830_v55  ;;  %v1429_v47 = vmax.f32 %v1082_v23, %v5332_v30  ;;  %v1109_v53 = vrot.slane %v830_v55, %v6990_v63  ;;  %v813_v60 = vmax.f32 %v775_v6, 0.0  ;;  %v1867_v55 = vld [vmem:[#allocation2] sm:$0xff] }
 0x148   : > { %v1426_v58 = vmax.f32 %v1067_v46, %v5329_v50  ;;  %v1730_v31 = vrot.slane %v1424_v49, %v6993_v8  ;;  %v1734_v22 = vrot.slane %v1425_v0, %v6993_v8  ;;  %v1430_v3 = vmax.f32 %v1084_v26, %v5333_v7 }
 0x149   : > { %v1116_v5 = vrot.slane %v1102_v56, %v6990_v63  ;;  %v1742_v51 = vrot.slane %v1427_v57, %v6993_v8  ;;  %v829_v12 = vmax.f32 %v811_v48, %v813_v60  ;;  %v1746_v13 = vrot.slane %v1428_v21, %v6993_v8 }
 0x14a   : > { %v1738_v62 = vrot.slane %v1426_v58, %v6993_v8  ;;  %v1836_v4 = vsel %vm1787_vm7, %v1730_v31, %v1726_v59  ;;  %v1117_v9 = vcombine.high %v1109_v53, %v1109_v53  ;;  %v1750_v14 = vrot.slane %v1429_v47, %v6993_v8  ;;  %v5364_v58 = vld [vmem:[%s8082_s3 + $0x50] sm:$0xff]  ;;  %v5365_v59 = vld [vmem:[%s8082_s3 + $0x58] sm:$0xff] }
 0x14b   : > { %v1837_v10 = vsel %vm1789_vm8, %v1734_v22, %v1836_v4  ;;  %v7258_v11 = vld [vmem:[#allocation2 + $0x61] sm:$0xff]  ;;  %v1085_v17 = vcombine.high %v829_v12, %v829_v12  ;;  %v1754_v20 = vrot.slane %v1430_v3, %v6993_v8  ;;  %v1118_v23 = vcombine.high %v1116_v5, %v1116_v5 }
 0x14c   : > { %v1838_v28 = vsel %vm1791_vm9, %v1738_v62, %v1837_v10  ;;  %5948 = vmatprep.mubr.msk.f32.mxu1 %vm1439_vm4, %v7258_v11  ;;  %v1092_v24 = vrot.slane %v829_v12, %v6990_v63  ;;  %v5338_v27 = vrot.slane %v1109_v53, 9  ;;  %v5339_v2 = vrot.slane %v1117_v9, 9  ;;  %v1868_v62 = vld [vmem:[#allocation2 + $0x10] sm:$0xff]  ;;  %v5374_v4 = vld [vmem:[%s8082_s3 + $0x60] sm:$0xff] }
 0x14d   : > { %v1839_v15 = vsel %vm1793_vm10, %v1742_v51, %v1838_v28  ;;  %v1099_v29 = vrot.slane %v1085_v17, %v6990_v63  ;;  %v5340_v34 = vrot.slane %v1116_v5, 9  ;;  %v5341_v33 = vrot.slane %v1118_v23, 9  ;;  %v7305_v10 = vld [vmem:[#allocation2 + $0x20] sm:$0xff]  ;;  %v7312_v28 = vld [vmem:[#allocation2 + $0x30] sm:$0xff] }
 0x14e   : > { %v1840_v44 = vsel %vm1795_vm11, %v1746_v13, %v1839_v15  ;;  %v1100_v26 = vcombine.high %v1092_v24, %v1092_v24  ;;  %v5334_v35 = vrot.slane %v1092_v24, 9  ;;  %v1435_v37 = vmax.f32 %v1109_v53, %v5338_v27  ;;  %v2150_v15 = vld [vmem:[#allocation2 + $0x2] sm:$0xff] }
 0x14f   : > { %v1841_v25 = vsel %vm1797_vm12, %v1750_v14, %v1840_v44  ;;  %v1101_v40 = vcombine.high %v1099_v29, %v1099_v29  ;;  %v5336_v43 = vrot.slane %v1099_v29, 9  ;;  %v1436_v42 = vmax.f32 %v1117_v9, %v5339_v2  ;;  %v7316_v9 = vld [vmem:[#allocation2 + $0x40] sm:$0xff]  ;;  %v7320_v14 = vld [vmem:[#allocation2 + $0x50] sm:$0xff]  ;;  %v5377_v44 = vld [vmem:[%s8082_s3 + $0x78] sm:$0xff] }
 0x150   : > { %v1842_v32 = vsel %vm1799_vm13, %v1754_v20, %v1841_v25  ;;  %v5335_v36 = vrot.slane %v1100_v26, 9  ;;  %v1431_v39 = vmax.f32 %v1092_v24, %v5334_v35  ;;  %v1437_v30 = vmax.f32 %v1116_v5, %v5340_v34  ;;  %v5375_v5 = vld [vmem:[%s8082_s3 + $0x68] sm:$0xff]  ;;  %v5376_v20 = vld [vmem:[%s8082_s3 + $0x70] sm:$0xff]  ;;  %v5386_v25 = vld [vmem:[%s8082_s3 + $0x80] sm:$0xff] }
 0x151   : > { %1865 = vst.msk [vmem:[#allocation2 + $0x71] sm:$0xff] %vm1439_vm4, %v1842_v32  ;;  %v5337_v38 = vrot.slane %v1101_v40, 9  ;;  %v1433_v46 = vmax.f32 %v1099_v29, %v5336_v43  ;;  %v1438_v50 = vmax.f32 %v1118_v23, %v5341_v33  ;;  %v1774_v49 = vrot.slane %v1435_v37, %v6993_v8  ;;  %v2151_v24 = vld [vmem:[#allocation2 + $0x12] sm:$0xff]  ;;  %v5387_v27 = vld [vmem:[%s8082_s3 + $0x88] sm:$0xff]  ;;  %v5398_v37 = vld [vmem:[%s8082_s3 + $0xa0] sm:$0xff] }
 0x152   : > { %v1432_v45 = vmax.f32 %v1100_v26, %v5335_v36  ;;  %v1758_v52 = vrot.slane %v1431_v39, %v6993_v8  ;;  %v1778_v0 = vrot.slane %v1436_v42, %v6993_v8  ;;  %v1782_v31 = vrot.slane %v1437_v30, %v6993_v8  ;;  %v7346_v29 = vld [vmem:[#allocation2 + $0x22] sm:$0xff]  ;;  %v7350_v2 = vld [vmem:[#allocation2 + $0x32] sm:$0xff] }
 0x153   : > { %v1434_v7 = vmax.f32 %v1101_v40, %v5337_v38  ;;  %v1766_v48 = vrot.slane %v1433_v46, %v6993_v8  ;;  %v1786_v47 = vrot.slane %v1438_v50, %v6993_v8  ;;  %v6350_v60 = vpack.c.bf16 %v5365_v59, %v5364_v58  ;;  %v7354_v26 = vld [vmem:[#allocation2 + $0x42] sm:$0xff]  ;;  %v7358_v34 = vld [vmem:[#allocation2 + $0x52] sm:$0xff] }
 0x154   : > { %v1762_v54 = vrot.slane %v1432_v45, %v6993_v8  ;;  %v6354_v13 = vpack.c.bf16 %v5375_v5, %v5374_v4  ;;  %v6358_v23 = vpack.c.bf16 %v5377_v44, %v5376_v20  ;;  %v6362_v32 = vpack.c.bf16 %v5387_v27, %v5386_v25  ;;  %v7362_v40 = vld [vmem:[#allocation2 + $0x62] sm:$0xff]  ;;  %v5388_v43 = vld [vmem:[%s8082_s3 + $0x90] sm:$0xff]  ;;  %v5389_v33 = vld [vmem:[%s8082_s3 + $0x98] sm:$0xff] }
 0x155   : > { %v1770_v57 = vrot.slane %v1434_v7, %v6993_v8  ;;  %v6366_v36 = vpack.c.bf16 %v5389_v33, %v5388_v43  ;;  %v5399_v38 = vld [vmem:[%s8082_s3 + $0xa8] sm:$0xff]  ;;  %v5400_v42 = vld [vmem:[%s8082_s3 + $0xb0] sm:$0xff]  ;;  %v5401_v45 = vld [vmem:[%s8082_s3 + $0xb8] sm:$0xff] }
 0x156   : > { %v1843_v6 = vsel %vm1787_vm7, %v1762_v54, %v1758_v52  ;;  %v6370_v39 = vpack.c.bf16 %v5399_v38, %v5398_v37  ;;  %v6374_v30 = vpack.c.bf16 %v5401_v45, %v5400_v42  ;;  %v5410_v7 = vld [vmem:[%s8082_s3 + $0xc0] sm:$0xff]  ;;  %v5411_v52 = vld [vmem:[%s8082_s3 + $0xc8] sm:$0xff]  ;;  %v5412_v50 = vld [vmem:[%s8082_s3 + $0xd0] sm:$0xff] }
 0x157   : > { %v1844_v56 = vsel %vm1789_vm8, %v1766_v48, %v1843_v6  ;;  %v6378_v48 = vpack.c.bf16 %v5411_v52, %v5410_v7  ;;  %v5413_v54 = vld [vmem:[%s8082_s3 + $0xd8] sm:$0xff]  ;;  %v5424_v58 = vld [vmem:[%s8082_s3 + $0xf0] sm:$0xff]  ;;  %v3380_v4 = vld [vmem:[%s8088_s9] sm:$0xff] }
 0x158   : > { %v7278_v21 = vld [vmem:[#allocation2 + $0x71] sm:$0xff]  ;;  %v1845_v22 = vsel %vm1791_vm9, %v1770_v57, %v1844_v56  ;;  %v5423_v57 = vld [vmem:[%s8082_s3 + $0xe8] sm:$0xff]  ;;  %v5434_v56 = vld [vmem:[%s8082_s3 + $0x100] sm:$0xff]  ;;  %6115 = vmatprep.mubr.msk.f32.mxu0 %vm3478_vm14, %v3380_v4 }
 0x159   : > { %5949 = vmatmul.mubr.msk.f32.gmra.mrb[2].mxu1 %vm1439_vm4, %v7278_v21  ;;  %v1846_v53 = vsel %vm1793_vm10, %v1774_v49, %v1845_v22  ;;  %v7328_v17 = vld [vmem:[#allocation2 + $0x70] sm:$0xff]  ;;  %v6382_v49 = vpack.c.bf16 %v5413_v54, %v5412_v50  ;;  %v5425_v59 = vld [vmem:[%s8082_s3 + $0xf8] sm:$0xff] }
 0x15a   : > { %5959 = vmatprep.mubr.msk.f32.mxu1 %vm1439_vm4, %v1867_v55  ;;  %v1847_v3 = vsel %vm1795_vm11, %v1778_v0, %v1846_v53  ;;  %v7366_v35 = vld [vmem:[#allocation2 + $0x72] sm:$0xff]  ;;  %v5422_v55 = vld [vmem:[%s8082_s3 + $0xe0] sm:$0xff] }
 0x15b   : > { %v1848_v51 = vsel %vm1797_vm12, %v1782_v31, %v1847_v3  ;;  %v6386_v0 = vpack.c.bf16 %v5423_v57, %v5422_v55  ;;  %v6390_v31 = vpack.c.bf16 %v5425_v59, %v5424_v58  ;;  %v2758_v53 = vld [vmem:[#allocation2 + $0x90] sm:$0xff]  ;;  %v5437_v3 = vld [vmem:[%s8082_s3 + $0x118] sm:$0xff] }
 0x15c   : > { %v1849_v12 = vsel %vm1799_vm13, %v1786_v47, %v1848_v51  ;;  %v5435_v47 = vld [vmem:[%s8082_s3 + $0x108] sm:$0xff]  ;;  %v7516_v51 = vld [vmem:[%s8083_s4] ss:$0 sm:$0xff] }
 0x15d   : > { %5960 = vmatmul.mubr.msk.f32.vlgmr.msra.gmra.mrb[4].mxu1 %vm1439_vm4, %v1868_v62  ;;  %1866 = vst.msk [vmem:[#allocation2 + $0x81] sm:$0xff] %vm1439_vm4, %v1849_v12  ;;  %v6394_v22 = vpack.c.bf16 %v5435_v47, %v5434_v56 }
 0x15e   : > { %5962 = vmatprep.mubr.msk.f32.mxu1 %vm1439_vm4, %v7305_v10  ;;  %6349 = vmatpush3.bf16.msra.mxu1 %v7207_v41  ;;  %v7324_v41 = vld [vmem:[#allocation2 + $0x60] sm:$0xff] }
 0x15f   : > { %6351 = vmatprep.subr.bf16.mxu1 %v6350_v60 }
 0x161   : > { %5963 = vmatmul.mubr.msk.f32.gmra.mrb[6].mxu1 %vm1439_vm4, %v7312_v28 }
 0x162   : > { %5965 = vmatprep.mubr.msk.f32.mxu1 %vm1439_vm4, %v7316_v9  ;;  %6353 = vmatpush3.bf16.msra.mxu1 %v6350_v60  ;;  %v5436_v60 = vld [vmem:[%s8082_s3 + $0x110] sm:$0xff] }
 0x163   : > { %6355 = vmatprep.subr.bf16.mxu1 %v6354_v13 }
 0x164   : > { %v2307_v46 = vld [vmem:[#allocation2 + $0x80] sm:$0xff] }
 0x165   : > { %5966 = vmatmul.mubr.msk.f32.gmra.mrb[0].mxu1 %vm1439_vm4, %v7320_v14  ;;  %v2607_v6 = vld [vmem:[#allocation2 + $0x82] sm:$0xff] }
 0x166   : > { %5968 = vmatprep.mubr.msk.f32.mxu1 %vm1439_vm4, %v7324_v41 }
 0x169   : > { %5969 = vmatmul.mubr.msk.f32.gmra.mrb[2].mxu1 %vm1439_vm4, %v7328_v17 }
 0x16a   : > { %5979 = vmatprep.mubr.msk.f32.mxu1 %vm1439_vm4, %v2150_v15 }
 0x16d   : > { %5980 = vmatmul.mubr.msk.f32.vlgmr.msra.gmra.mrb[4].mxu1 %vm1439_vm4, %v2151_v24 }
 0x16e   : > { %5982 = vmatprep.mubr.msk.f32.mxu1 %vm1439_vm4, %v7346_v29  ;;  %6357 = vmatpush3.bf16.msra.mxu1 %v6354_v13 }
 0x16f   : > { %6359 = vmatprep.subr.bf16.mxu1 %v6358_v23 }
 0x171   : > { %5983 = vmatmul.mubr.msk.f32.gmra.mrb[6].mxu1 %vm1439_vm4, %v7350_v2 }
 0x172   : > { %5985 = vmatprep.mubr.msk.f32.mxu1 %vm1439_vm4, %v7354_v26  ;;  %6361 = vmatpush3.bf16.msra.mxu1 %v6358_v23 }
 0x173   : > { %6363 = vmatprep.subr.bf16.mxu1 %v6362_v32 }
 0x175   : > { %5986 = vmatmul.mubr.msk.f32.gmra.mrb[0].mxu1 %vm1439_vm4, %v7358_v34 }
 0x176   : > { %5988 = vmatprep.mubr.msk.f32.mxu1 %vm1439_vm4, %v7362_v40 }
 0x179   : > { %5989 = vmatmul.mubr.msk.f32.gmra.mrb[2].mxu1 %vm1439_vm4, %v7366_v35 }
 0x17a   : > { %5999 = vmatprep.mubr.msk.f32.mxu1 %vm1439_vm4, %v1868_v62  ;;  %v6398_v62 = vpack.c.bf16 %v5437_v3, %v5436_v60 }
 0x17d   : > { %6000 = vmatmul.mubr.msk.f32.vlgmr.msra.gmra.mrb[4].mxu1 %vm1439_vm4, %v7305_v10 }
 0x17e   : > { %6002 = vmatprep.mubr.msk.f32.mxu1 %vm1439_vm4, %v7312_v28  ;;  %6365 = vmatpush3.bf16.msra.mxu1 %v6362_v32 }
 0x17f   : > { %6367 = vmatprep.subr.bf16.mxu1 %v6366_v36 }
 0x181   : > { %6003 = vmatmul.mubr.msk.f32.gmra.mrb[6].mxu1 %vm1439_vm4, %v7316_v9 }
 0x182   : > { %6005 = vmatprep.mubr.msk.f32.mxu1 %vm1439_vm4, %v7320_v14  ;;  %6369 = vmatpush3.bf16.msra.mxu1 %v6366_v36 }
 0x183   : > { %6371 = vmatprep.subr.bf16.mxu1 %v6370_v39 }
 0x185   : > { %6006 = vmatmul.mubr.msk.f32.gmra.mrb[0].mxu1 %vm1439_vm4, %v7324_v41 }
 0x186   : > { %6008 = vmatprep.mubr.msk.f32.mxu1 %vm1439_vm4, %v7328_v17 }
 0x189   : > { %6009 = vmatmul.mubr.msk.f32.gmra.mrb[2].mxu1 %vm1439_vm4, %v2307_v46 }
 0x18a   : > { %6019 = vmatprep.mubr.msk.f32.mxu1 %vm1439_vm4, %v7050_v1  ;;  %v2457_v1 = vld [vmem:[#allocation2 + $0x81] sm:$0xff] }
 0x18d   : > { %6020 = vmatmul.mubr.msk.f32.vlgmr.msra.gmra.mrb[4].mxu1 %vm1439_vm4, %v7086_v61 }
 0x18e   : > { %6022 = vmatprep.mubr.msk.f32.mxu1 %vm1439_vm4, %v7157_v19  ;;  %6373 = vmatpush3.bf16.msra.mxu1 %v6370_v39 }
 0x18f   : > { %6375 = vmatprep.subr.bf16.mxu1 %v6374_v30 }
 0x191   : > { %6023 = vmatmul.mubr.msk.f32.gmra.mrb[6].mxu1 %vm1439_vm4, %v7186_v18 }
 0x192   : > { %6025 = vmatprep.mubr.msk.f32.mxu1 %vm1439_vm4, %v7224_v16  ;;  %6377 = vmatpush3.bf16.msra.mxu1 %v6374_v30 }
 0x193   : > { %6379 = vmatprep.subr.bf16.mxu1 %v6378_v48 }
 0x195   : > { %6026 = vmatmul.mubr.msk.f32.gmra.mrb[0].mxu1 %vm1439_vm4, %v7258_v11 }
 0x196   : > { %6028 = vmatprep.mubr.msk.f32.mxu1 %vm1439_vm4, %v7278_v21 }
 0x199   : > { %6029 = vmatmul.mubr.msk.f32.gmra.mrb[2].mxu1 %vm1439_vm4, %v2457_v1 }
 0x19a   : > { %6039 = vmatprep.mubr.msk.f32.mxu1 %vm1439_vm4, %v2151_v24 }
 0x19d   : > { %6040 = vmatmul.mubr.msk.f32.vlgmr.msra.gmra.mrb[4].mxu1 %vm1439_vm4, %v7346_v29 }
 0x19e   : > { %6042 = vmatprep.mubr.msk.f32.mxu1 %vm1439_vm4, %v7350_v2  ;;  %6381 = vmatpush3.bf16.msra.mxu1 %v6378_v48 }
 0x19f   : > { %6383 = vmatprep.subr.bf16.mxu1 %v6382_v49 }
 0x1a1   : > { %6043 = vmatmul.mubr.msk.f32.gmra.mrb[6].mxu1 %vm1439_vm4, %v7354_v26 }
 0x1a2   : > { %6045 = vmatprep.mubr.msk.f32.mxu1 %vm1439_vm4, %v7358_v34  ;;  %6385 = vmatpush3.bf16.msra.mxu1 %v6382_v49 }
 0x1a3   : > { %6387 = vmatprep.subr.bf16.mxu1 %v6386_v0 }
 0x1a5   : > { %6046 = vmatmul.mubr.msk.f32.gmra.mrb[0].mxu1 %vm1439_vm4, %v7362_v40 }
 0x1a6   : > { %6048 = vmatprep.mubr.msk.f32.mxu1 %vm1439_vm4, %v7366_v35 }
 0x1a9   : > { %6049 = vmatmul.mubr.msk.f32.gmra.mrb[2].mxu1 %vm1439_vm4, %v2607_v6 }
 0x1aa   : > { %6059 = vmatprep.mubr.msk.f32.mxu1 %vm1439_vm4, %v7305_v10 }
 0x1ad   : > { %6060 = vmatmul.mubr.msk.f32.vlgmr.msra.gmra.mrb[4].mxu1 %vm1439_vm4, %v7312_v28 }
 0x1ae   : > { %6062 = vmatprep.mubr.msk.f32.mxu1 %vm1439_vm4, %v7316_v9  ;;  %6389 = vmatpush3.bf16.msra.mxu1 %v6386_v0 }
 0x1af   : > { %6391 = vmatprep.subr.bf16.mxu1 %v6390_v31 }
 0x1b1   : > { %6063 = vmatmul.mubr.msk.f32.gmra.mrb[6].mxu1 %vm1439_vm4, %v7320_v14 }
 0x1b2   : > { %6065 = vmatprep.mubr.msk.f32.mxu1 %vm1439_vm4, %v7324_v41  ;;  %6393 = vmatpush3.bf16.msra.mxu1 %v6390_v31 }
 0x1b3   : > { %6395 = vmatprep.subr.bf16.mxu1 %v6394_v22 }
 0x1b5   : > { %6066 = vmatmul.mubr.msk.f32.gmra.mrb[0].mxu1 %vm1439_vm4, %v7328_v17 }
 0x1b6   : > { %6068 = vmatprep.mubr.msk.f32.mxu1 %vm1439_vm4, %v2307_v46 }
 0x1b9   : > { %6069 = vmatmul.mubr.msk.f32.gmra.mrb[2].mxu1 %vm1439_vm4, %v2758_v53 }
 0x1ba   : > { %6079 = vmatprep.mubr.msk.f32.mxu1 %vm1439_vm4, %v7086_v61  ;;  %v2908_v61 = vld [vmem:[#allocation2 + $0x91] sm:$0xff] }
 0x1bd   : > { %6080 = vmatmul.mubr.msk.f32.vlgmr.msra.gmra.mrb[4].mxu1 %vm1439_vm4, %v7157_v19  ;;  %v3058_v19 = vld [vmem:[#allocation2 + $0x92] sm:$0xff] }
 0x1be   : > { %6082 = vmatprep.mubr.msk.f32.mxu1 %vm1439_vm4, %v7186_v18  ;;  %6397 = vmatpush3.bf16.msra.mxu1 %v6394_v22 }
 0x1bf   : > { %6399 = vmatprep.subr.bf16.mxu1 %v6398_v62 }
 0x1c1   : > { %6083 = vmatmul.mubr.msk.f32.gmra.mrb[6].mxu1 %vm1439_vm4, %v7224_v16 }
 0x1c2   : > { %6085 = vmatprep.mubr.msk.f32.mxu1 %vm1439_vm4, %v7258_v11  ;;  %6401 = vmatpush3.bf16.msra.mxu1 %v6398_v62 }
 0x1c5   : > { %6086 = vmatmul.mubr.msk.f32.gmra.mrb[0].mxu1 %vm1439_vm4, %v7278_v21 }
 0x1c6   : > { %6088 = vmatprep.mubr.msk.f32.mxu1 %vm1439_vm4, %v2457_v1 }
 0x1c9   : > { %6089 = vmatmul.mubr.msk.f32.gmra.mrb[2].mxu1 %vm1439_vm4, %v2908_v61 }
 0x1ca   : > { %6099 = vmatprep.mubr.msk.f32.mxu1 %vm1439_vm4, %v7346_v29 }
 0x1cd   : > { %6100 = vmatmul.mubr.msk.f32.vlgmr.msra.gmra.mrb[4].mxu1 %vm1439_vm4, %v7350_v2 }
 0x1ce   : > { %6102 = vmatprep.mubr.msk.f32.mxu1 %vm1439_vm4, %v7354_v26 }
 0x1d1   : > { %6103 = vmatmul.mubr.msk.f32.gmra.mrb[6].mxu1 %vm1439_vm4, %v7358_v34 }
 0x1d2   : > { %6105 = vmatprep.mubr.msk.f32.mxu1 %vm1439_vm4, %v7362_v40 }
 0x1d5   : > { %6106 = vmatmul.mubr.msk.f32.gmra.mrb[0].mxu1 %vm1439_vm4, %v7366_v35 }
 0x1d6   : > { %6108 = vmatprep.mubr.msk.f32.mxu1 %vm1439_vm4, %v2607_v6 }
 0x1d9   : > { %6109 = vmatmul.mubr.msk.f32.gmra.mrb[2].mxu1 %vm1439_vm4, %v3058_v19 }
 0x1df   : > { %v5941_v18 = vpop.f32.mrb[32].mxu0 }
 0x1e0   : > { %v1982_v16 = vpop.f32.mrb[33].mxu0 }
 0x1f9   : > { %v5944_v11 = vpop.f32.mrb[34].mxu0 }
 0x1fa   : > { %v1992_v21 = vpop.f32.mrb[35].mxu0 }
 0x2a0   : > { %v6101_v5 = vpop.f32.mrb[4].mxu1 }
 0x2a1   : > { %v6546_v10 = vadd.f32 %v6101_v5, %v5941_v18  ;;  %v3154_v12 = vpop.f32.mrb[5].mxu1 }
 0x2a2   : > { %v6547_v13 = vadd.f32 %v3154_v12, %v1982_v16 }
 0x2a3   : > { %v3209_v28 = vadd.f32 %v6546_v10, %v7516_v51 }
 0x2a4   : > { %v3208_v9 = vadd.f32 %v6547_v13, %v7516_v51  ;;  %v6104_v14 = vpop.f32.mrb[6].mxu1 }
 0x2a5   : > { %v3217_v41 = vmax.f32 %v3209_v28, 0.0  ;;  %v6548_v15 = vadd.f32 %v6104_v14, %v5944_v11  ;;  %v3164_v17 = vpop.f32.mrb[7].mxu1 }
 0x2a6   : > { %v3216_v20 = vmax.f32 %v3208_v9, 0.0  ;;  %v6549_v44 = vadd.f32 %v3164_v17, %v1992_v21 }
 0x2a7   : > { %v3211_v23 = vadd.f32 %v6548_v15, %v7516_v51 }
 0x2a8   : > { %v3224_v24 = vmax.f32 %v3216_v20, %v3217_v41  ;;  %v3210_v25 = vadd.f32 %v6549_v44, %v7516_v51  ;;  %v6107_v27 = vpop.f32.mrb[0].mxu1 }
 0x2a9   : > { %v3219_v29 = vmax.f32 %v3211_v23, 0.0  ;;  %v3213_v32 = vadd.f32 %v6107_v27, %v7516_v51  ;;  %v3174_v2 = vpop.f32.mrb[1].mxu1 }
 0x2aa   : > { %v3232_v26 = vcombine.high %v3224_v24, %v3224_v24  ;;  %v3239_v34 = vrot.slane %v3224_v24, %v6990_v63  ;;  %v3218_v40 = vmax.f32 %v3210_v25, 0.0  ;;  %v3212_v35 = vadd.f32 %v7516_v51, %v3174_v2 }
 0x2ab   : > { %v3221_v43 = vmax.f32 %v3213_v32, 0.0 }
 0x2ac   : > { %v3246_v33 = vrot.slane %v3232_v26, %v6990_v63  ;;  %v3247_v36 = vcombine.high %v3239_v34, %v3239_v34  ;;  %v5447_v37 = vrot.slane %v3239_v34, 9  ;;  %v3225_v38 = vmax.f32 %v3218_v40, %v3219_v29  ;;  %v6110_v39 = vpop.f32.mrb[2].mxu1 }
 0x2ad   : > { %v3220_v46 = vmax.f32 %v3212_v35, 0.0  ;;  %v3215_v42 = vadd.f32 %v6110_v39, %v7516_v51  ;;  %v3184_v45 = vpop.f32.mrb[3].mxu1 }
 0x2ae   : > { %v3248_v30 = vcombine.high %v3246_v33, %v3246_v33  ;;  %v5448_v7 = vrot.slane %v3247_v36, 9  ;;  %v5449_v52 = vrot.slane %v3246_v33, 9  ;;  %v3364_v48 = vmax.f32 %v3239_v34, %v5447_v37 }
 0x2af   : > { %v3249_v1 = vcombine.high %v3225_v38, %v3225_v38  ;;  %v3256_v50 = vrot.slane %v3225_v38, %v6990_v63  ;;  %v3226_v54 = vmax.f32 %v3220_v46, %v3221_v43  ;;  %v3223_v49 = vmax.f32 %v3215_v42, 0.0 }
 0x2b0   : > { %v5450_v55 = vrot.slane %v3248_v30, 9  ;;  %v3365_v57 = vmax.f32 %v3247_v36, %v5448_v7  ;;  %v3366_v0 = vmax.f32 %v3246_v33, %v5449_v52  ;;  %v3401_v6 = vrot.slane %v3364_v48, %v6993_v8 }
 0x2b1   : > { %v3263_v58 = vrot.slane %v3249_v1, %v6990_v63  ;;  %v3264_v59 = vcombine.high %v3256_v50, %v3256_v50  ;;  %v5451_v31 = vrot.slane %v3256_v50, 9  ;;  %v3266_v56 = vcombine.high %v3226_v54, %v3226_v54 }
 0x2b2   : > { %v3367_v47 = vmax.f32 %v3248_v30, %v5450_v55  ;;  %v3405_v22 = vrot.slane %v3365_v57, %v6993_v8  ;;  %v3409_v53 = vrot.slane %v3366_v0, %v6993_v8  ;;  %v3273_v60 = vrot.slane %v3226_v54, %v6990_v63 }
 0x2b3   : > { %v3265_v3 = vcombine.high %v3263_v58, %v3263_v58  ;;  %v5452_v62 = vrot.slane %v3264_v59, 9  ;;  %v5453_v61 = vrot.slane %v3263_v58, 9  ;;  %v3368_v19 = vmax.f32 %v3256_v50, %v5451_v31 }
 0x2b4   : > { %v3413_v18 = vrot.slane %v3367_v47, %v6993_v8  ;;  %v3462_v16 = vsel %vm1787_vm7, %v3405_v22, %v3401_v6  ;;  %v3280_v11 = vrot.slane %v3266_v56, %v6990_v63  ;;  %v3281_v21 = vcombine.high %v3273_v60, %v3273_v60 }
 0x2b5   : > { %v3463_v4 = vsel %vm1789_vm8, %v3409_v53, %v3462_v16  ;;  %v5454_v5 = vrot.slane %v3265_v3, 9  ;;  %v3369_v10 = vmax.f32 %v3264_v59, %v5452_v62  ;;  %v3370_v12 = vmax.f32 %v3263_v58, %v5453_v61  ;;  %v5466_v62 = vld [vmem:[%s8088_s9 + $0x18] sm:$0xff]  ;;  %v5469_v61 = vld [vmem:[%s8088_s9 + $0x20] sm:$0xff]  ;;  %v3766_v16 = vld [vmem:[%s8084_s5 + $0x88] sm:$0xff] }
 0x2b6   : > { %v3417_v13 = vrot.slane %v3368_v19, %v6993_v8  ;;  %v3464_v28 = vsel %vm1791_vm9, %v3413_v18, %v3463_v4  ;;  %v3282_v9 = vcombine.high %v3280_v11, %v3280_v11  ;;  %v5455_v14 = vrot.slane %v3273_v60, 9  ;;  %v5470_v19 = vld [vmem:[%s8088_s9 + $0x28] sm:$0xff]  ;;  %v3765_v18 = vld [vmem:[%s8084_s5 + $0x80] sm:$0xff] }
 0x2b7   : > { %v3371_v41 = vmax.f32 %v3265_v3, %v5454_v5  ;;  %v3421_v15 = vrot.slane %v3369_v10, %v6993_v8  ;;  %v3425_v17 = vrot.slane %v3370_v12, %v6993_v8  ;;  %v5456_v20 = vrot.slane %v3281_v21, 9  ;;  %v3381_v3 = vld [vmem:[%s8088_s9 + $0x8] sm:$0xff]  ;;  %v3767_v5 = vld [vmem:[%s8084_s5 + $0x90] sm:$0xff]  ;;  %v3768_v10 = vld [vmem:[%s8084_s5 + $0x98] sm:$0xff] }
 0x2b8   : > { %v3465_v44 = vsel %vm1793_vm10, %v3417_v13, %v3464_v28  ;;  %v5457_v23 = vrot.slane %v3280_v11, 9  ;;  %v5458_v24 = vrot.slane %v3282_v9, 9  ;;  %v3372_v25 = vmax.f32 %v3273_v60, %v5455_v14  ;;  %v3750_v4 = vld [vmem:[%s8084_s5 + $0x8] sm:$0xff]  ;;  %v3751_v28 = vld [vmem:[%s8084_s5 + $0x10] sm:$0xff]  ;;  %v3769_v14 = vld [vmem:[%s8084_s5 + $0xa0] sm:$0xff] }
 0x2b9   : > { %v3429_v27 = vrot.slane %v3371_v41, %v6993_v8  ;;  %v3466_v29 = vsel %vm1795_vm11, %v3421_v15, %v3465_v44  ;;  %v3373_v32 = vmax.f32 %v3281_v21, %v5456_v20  ;;  %v3214_v2 = vadd.f32 %v7516_v51, %v3184_v45  ;;  %v3770_v41 = vld [vmem:[%s8084_s5 + $0xa8] sm:$0xff]  ;;  %v3753_v20 = vld [vmem:[%s8084_s5 + $0x20] sm:$0xff] }
 0x2ba   : > { %v3467_v26 = vsel %vm1797_vm12, %v3425_v17, %v3466_v29  ;;  %v3374_v34 = vmax.f32 %v3280_v11, %v5457_v23  ;;  %v3375_v33 = vmax.f32 %v3282_v9, %v5458_v24  ;;  %v3433_v36 = vrot.slane %v3372_v25, %v6993_v8  ;;  %v3749_v11 = vld [vmem:[%s8084_s5] sm:$0xff]  ;;  %v3752_v9 = vld [vmem:[%s8084_s5 + $0x18] sm:$0xff]  ;;  %v3754_v44 = vld [vmem:[%s8084_s5 + $0x28] sm:$0xff] }
 0x2bb   : > { %v3437_v40 = vrot.slane %v3373_v32, %v6993_v8  ;;  %v3222_v35 = vmax.f32 %v3214_v2, 0.0  ;;  %v7548_v43 = vsel %vm1799_vm13, %v3429_v27, %v3467_v26  ;;  %v6414_v21 = vpack.c.bf16 %v3766_v16, %v3765_v18  ;;  %v3771_v23 = vld [vmem:[%s8084_s5 + $0xb0] sm:$0xff]  ;;  %v3772_v24 = vld [vmem:[%s8084_s5 + $0xb8] sm:$0xff]  ;;  %v3773_v2 = vld [vmem:[%s8084_s5 + $0xc0] sm:$0xff] }
 0x2bc   : > { %v3441_v37 = vrot.slane %v3374_v34, %v6993_v8  ;;  %v3445_v42 = vrot.slane %v3375_v33, %v6993_v8  ;;  %v6416_v12 = vpack.c.bf16 %v3750_v4, %v3749_v11  ;;  %v6418_v13 = vpack.c.bf16 %v3768_v10, %v3767_v5  ;;  %v3755_v29 = vld [vmem:[%s8084_s5 + $0x30] sm:$0xff]  ;;  %v3756_v32 = vld [vmem:[%s8084_s5 + $0x38] sm:$0xff]  ;;  %v3774_v26 = vld [vmem:[%s8084_s5 + $0xc8] sm:$0xff] }
 0x2bd   : > { %v3227_v38 = vmax.f32 %v3222_v35, %v3223_v49  ;;  %v3469_v39 = vsel %vm1787_vm7, %v3437_v40, %v3433_v36  ;;  %v6420_v15 = vpack.c.bf16 %v3752_v9, %v3751_v28  ;;  %v6422_v17 = vpack.c.bf16 %v3770_v41, %v3769_v14  ;;  %v3757_v35 = vld [vmem:[%s8084_s5 + $0x40] sm:$0xff]  ;;  %v3758_v33 = vld [vmem:[%s8084_s5 + $0x48] sm:$0xff]  ;;  %v3775_v36 = vld [vmem:[%s8084_s5 + $0xd0] sm:$0xff] }
 0x2be   : > { %v3470_v45 = vsel %vm1789_vm8, %v3441_v37, %v3469_v39  ;;  %v6424_v25 = vpack.c.bf16 %v3754_v44, %v3753_v20  ;;  %v6426_v27 = vpack.c.bf16 %v3772_v24, %v3771_v23  ;;  %v6428_v34 = vpack.c.bf16 %v3756_v32, %v3755_v29  ;;  %v3776_v37 = vld [vmem:[%s8084_s5 + $0xd8] sm:$0xff]  ;;  %v5474_v24 = vld [vmem:[%s8089_s10 + $0x48] sm:$0xff]  ;;  %v5477_v32 = vld [vmem:[%s8089_s10 + $0x60] sm:$0xff] }
 0x2bf   : > { %v3283_v46 = vcombine.high %v3227_v38, %v3227_v38  ;;  %v3290_v51 = vrot.slane %v3227_v38, %v6990_v63  ;;  %v3471_v55 = vsel %vm1791_vm9, %v3445_v42, %v3470_v45  ;;  %v6430_v40 = vpack.c.bf16 %v3774_v26, %v3773_v2  ;;  %v3777_v42 = vld [vmem:[%s8084_s5 + $0xe0] sm:$0xff]  ;;  %v3778_v45 = vld [vmem:[%s8084_s5 + $0xe8] sm:$0xff]  ;;  %v5476_v29 = vld [vmem:[%s8089_s10 + $0x58] sm:$0xff] }
 0x2c0   : > { %v6432_v38 = vpack.c.bf16 %v3758_v33, %v3757_v35  ;;  %v6434_v39 = vpack.c.bf16 %v3776_v37, %v3775_v36  ;;  %v5478_v2 = vld [vmem:[%s8089_s10 + $0x68] sm:$0xff]  ;;  %v5479_v26 = vld [vmem:[%s8089_s10 + $0x70] sm:$0xff]  ;;  %v3856_v35 = vld [vmem:[%s8089_s10] sm:$0xff] }
 0x2c1   : > { %v3297_v30 = vrot.slane %v3283_v46, %v6990_v63  ;;  %v3298_v7 = vcombine.high %v3290_v51, %v3290_v51  ;;  %v5459_v52 = vrot.slane %v3290_v51, 9  ;;  %v3759_v46 = vld [vmem:[%s8084_s5 + $0x50] sm:$0xff]  ;;  %v3857_v37 = vld [vmem:[%s8089_s10 + $0x8] sm:$0xff] }
 0x2c3   : > { %v3299_v48 = vcombine.high %v3297_v30, %v3297_v30  ;;  %v5460_v1 = vrot.slane %v3298_v7, 9  ;;  %v5461_v50 = vrot.slane %v3297_v30, 9  ;;  %v3376_v54 = vmax.f32 %v3290_v51, %v5459_v52  ;;  %v3760_v51 = vld [vmem:[%s8084_s5 + $0x58] sm:$0xff]  ;;  %v3761_v52 = vld [vmem:[%s8084_s5 + $0x60] sm:$0xff] }
 0x2c5   : > { %v5462_v49 = vrot.slane %v3299_v48, 9  ;;  %v3377_v57 = vmax.f32 %v3298_v7, %v5460_v1  ;;  %v3378_v0 = vmax.f32 %v3297_v30, %v5461_v50  ;;  %v3449_v6 = vrot.slane %v3376_v54, %v6993_v8  ;;  %v3779_v50 = vld [vmem:[%s8084_s5 + $0xf0] sm:$0xff]  ;;  %v3780_v54 = vld [vmem:[%s8084_s5 + $0xf8] sm:$0xff] }
 0x2c6   : > { %v6436_v30 = vpack.c.bf16 %v3760_v51, %v3759_v46  ;;  %v6438_v7 = vpack.c.bf16 %v3778_v45, %v3777_v42  ;;  %v3859_v46 = vld [vmem:[%s8089_s10 + $0x18] sm:$0xff]  ;;  %v3860_v51 = vld [vmem:[%s8089_s10 + $0x20] sm:$0xff]  ;;  %v3861_v42 = vld [vmem:[%s8089_s10 + $0x28] sm:$0xff] }
 0x2c7   : > { %v3379_v58 = vmax.f32 %v3299_v48, %v5462_v49  ;;  %v3453_v59 = vrot.slane %v3377_v57, %v6993_v8  ;;  %v3457_v31 = vrot.slane %v3378_v0, %v6993_v8  ;;  %v3472_v63 = vsel %vm1793_vm10, %v3449_v6, %v3471_v55  ;;  %v3762_v48 = vld [vmem:[%s8084_s5 + $0x68] sm:$0xff]  ;;  %v3763_v49 = vld [vmem:[%s8084_s5 + $0x70] sm:$0xff]  ;;  %v3764_v57 = vld [vmem:[%s8084_s5 + $0x78] sm:$0xff] }
 0x2c8   : > { %v6440_v1 = vpack.c.bf16 %v3762_v48, %v3761_v52  ;;  %v6442_v55 = vpack.c.bf16 %v3780_v54, %v3779_v50  ;;  %v6444_v0 = vpack.c.bf16 %v3764_v57, %v3763_v49  ;;  %v3862_v45 = vld [vmem:[%s8089_s10 + $0x30] sm:$0xff]  ;;  %v5498_v52 = vld [vmem:[%s8089_s10 + $0x88] sm:$0xff]  ;;  %v5501_v50 = vld [vmem:[%s8089_s10 + $0xa0] sm:$0xff] }
 0x2c9   : > { %v3461_v56 = vrot.slane %v3379_v58, %v6993_v8  ;;  %v3473_v47 = vsel %vm1795_vm11, %v3453_v59, %v3472_v63  ;;  %v5465_v8 = vld [vmem:[%s8088_s9 + $0x10] sm:$0xff]  ;;  %v5502_v54 = vld [vmem:[%s8089_s10 + $0xa8] sm:$0xff]  ;;  %v5504_v49 = vld [vmem:[%s8089_s10 + $0xb8] sm:$0xff] }
 0x2ca   : > { %v3474_v22 = vsel %vm1797_vm12, %v3457_v31, %v3473_v47  ;;  %v5499_v48 = vld [vmem:[%s8089_s10 + $0x90] sm:$0xff]  ;;  %v5513_v57 = vld [vmem:[%s8089_s10 + $0xc0] sm:$0xff] }
 0x2cb   : > { %v7566_v53 = vsel %vm1799_vm13, %v3461_v56, %v3474_v22 }
 0x2cc   : > { %v6402_v60 = vpack.c.bf16 %v7566_v53, %v7548_v43 }
 0x2ce   : > { %6403 = vmatprep.subr.bf16.mxu0 %v6402_v60 }
 0x2cf   : > { %6405 = vmatpush3.bf16.msra.mxu0 %v6402_v60 }
 0x2d0   : > { %6407 = vmatprep.subr.bf16.mxu0 %v6402_v60 }
 0x2d2   : > { %6116 = vmatmul.mubr.msk.f32.vlgmr.msra.gmra.mrb[36].mxu0 %vm3478_vm14, %v3381_v3 }
 0x2d3   : > { %6409 = vmatpush3.bf16.msra.mxu0 %v6402_v60  ;;  %6122 = vmatprep.mubr.msk.f32.mxu0 %vm3478_vm14, %v5465_v8 }
 0x2d4   : > { %6411 = vmatprep.subr.bf16.mxu0 %v6402_v60 }
 0x2d6   : > { %6123 = vmatmul.mubr.msk.f32.vlgmr.msra.gmra.mrb[38].mxu0 %vm3478_vm14, %v5466_v62 }
 0x2d7   : > { %6413 = vmatpush3.bf16.msra.mxu0 %v6402_v60  ;;  %6129 = vmatprep.mubr.msk.f32.mxu0 %vm3478_vm14, %v5469_v61 }
 0x2d8   : > { %6415 = vmatprep.subr.bf16.mxu0 %v6414_v21 }
 0x2da   : > { %6130 = vmatmul.mubr.msk.f32.vlgmr.msra.gmra.mrb[40].mxu0 %vm3478_vm14, %v5470_v19 }
 0x2db   : > { %6417 = vmatpush3.bf16.msra.mxu0 %v6416_v12  ;;  %v5473_v12 = vld [vmem:[%s8089_s10 + $0x40] sm:$0xff] }
 0x2dc   : > { %6419 = vmatprep.subr.bf16.mxu0 %v6418_v13 }
 0x2df   : > { %6421 = vmatpush3.bf16.msra.mxu0 %v6420_v15 }
 0x2e0   : > { %6423 = vmatprep.subr.bf16.mxu0 %v6422_v17 }
 0x2e3   : > { %6425 = vmatpush3.bf16.msra.mxu0 %v6424_v25  ;;  %v5475_v25 = vld [vmem:[%s8089_s10 + $0x50] sm:$0xff] }
 0x2e4   : > { %6427 = vmatprep.subr.bf16.mxu0 %v6426_v27 }
 0x2e7   : > { %6429 = vmatpush3.bf16.msra.mxu0 %v6428_v34 }
 0x2e8   : > { %6431 = vmatprep.subr.bf16.mxu0 %v6430_v40  ;;  %v5480_v40 = vld [vmem:[%s8089_s10 + $0x78] sm:$0xff] }
 0x2eb   : > { %6433 = vmatpush3.bf16.msra.mxu0 %v6432_v38  ;;  %v3858_v38 = vld [vmem:[%s8089_s10 + $0x10] sm:$0xff] }
 0x2ec   : > { %6435 = vmatprep.subr.bf16.mxu0 %v6434_v39 }
 0x2ef   : > { %6437 = vmatpush3.bf16.msra.mxu0 %v6436_v30  ;;  %v3863_v30 = vld [vmem:[%s8089_s10 + $0x38] sm:$0xff] }
 0x2f0   : > { %6439 = vmatprep.subr.bf16.mxu0 %v6438_v7  ;;  %v5497_v7 = vld [vmem:[%s8089_s10 + $0x80] sm:$0xff] }
 0x2f3   : > { %6441 = vmatpush3.bf16.msra.mxu0 %v6440_v1  ;;  %v5500_v1 = vld [vmem:[%s8089_s10 + $0x98] sm:$0xff] }
 0x2f4   : > { %6443 = vmatprep.subr.bf16.mxu0 %v6442_v55  ;;  %v5503_v55 = vld [vmem:[%s8089_s10 + $0xb0] sm:$0xff] }
 0x2f7   : > { %6445 = vmatpush3.bf16.msra.mxu0 %v6444_v0  ;;  %v5514_v0 = vld [vmem:[%s8089_s10 + $0xc8] sm:$0xff] }
 0x3a5   : > { %v6117_v6 = vpop.f32.mrb[36].mxu0 }
 0x3a6   : > { %v3551_v58 = vpop.f32.mrb[37].mxu0 }
 0x3a9   : > { %v6124_v59 = vpop.f32.mrb[38].mxu0 }
 0x3aa   : > { %v3635_v31 = vpop.f32.mrb[39].mxu0 }
 0x3ad   : > { %v6131_v63 = vpop.f32.mrb[40].mxu0 }
 0x3ae   : > { %v6654_v56 = vpack.i.bf16 %v6117_v6, %v6131_v63  ;;  %v3719_v47 = vpop.f32.mrb[41].mxu0  ;;  %v5515_v6 = vld [vmem:[%s8089_s10 + $0xd0] sm:$0xff] }
 0x3af   : > { %v6649_v22 = vpack.i.bf16 %v3551_v58, %v3719_v47  ;;  %v5516_v58 = vld [vmem:[%s8089_s10 + $0xd8] sm:$0xff]  ;;  %v5519_v63 = vld [vmem:[%s8089_s10 + $0xf0] sm:$0xff]  ;;  %v4466_v47 = vld [vmem:[%s8090_s11] sm:$0xff] }
 0x3b0   : > { %6212 = vmatprep.mubr.msk.f32.mxu1 %vm3744_vm15, %v4466_v47 }
 0x3b1   : > { %6650 = vrot.lane.b32.xlu0 %v6649_v22, %s6779_s13  ;;  %v5554_v22 = vld [vmem:[%s8090_s11 + $0x80] sm:$0xff] }
 0x3b5   : > { %6655 = vrot.lane.b32.xlu0 %v6654_v56, %s6779_s13  ;;  %v5520_v56 = vld [vmem:[%s8089_s10 + $0xf8] sm:$0xff] }
 0x423   : > { %v6651_v60 = vpop.permute.xlu0 %6650 }
 0x424   : > { %v6653_v3 = vunpack.i.h.bf16 %v6651_v60  ;;  %v6652_v8 = vunpack.i.l.bf16 %v6651_v60  ;;  %v5529_v60 = vld [vmem:[%s8085_s6] ss:$0 sm:$0xff] }
 0x426   : > { %v3747_v62 = vsel %vm3744_vm15, %v3635_v31, %v6652_v8  ;;  %v3745_v61 = vsel %vm3744_vm15, %v7548_v43, %v6653_v3  ;;  %v5518_v31 = vld [vmem:[%s8089_s10 + $0xe8] sm:$0xff] }
 0x427   : > { %v6656_v19 = vpop.permute.xlu0 %6655  ;;  %3845 = vmatprep.mubr.f32.mxu0 %v3747_v62 }
 0x428   : > { %v6658_v18 = vunpack.i.h.bf16 %v6656_v19  ;;  %v6657_v16 = vunpack.i.l.bf16 %v6656_v19  ;;  %3846 = vmatmul.mubr.f32.vlgmr.msra.gmra.mrb[42].mxu0 %v3745_v61 }
 0x42a   : > { %v3748_v11 = vsel %vm3744_vm15, %v6124_v59, %v6657_v16  ;;  %v3746_v21 = vsel %vm3744_vm15, %v7566_v53, %v6658_v18  ;;  %v5517_v59 = vld [vmem:[%s8089_s10 + $0xe0] sm:$0xff] }
 0x42b   : > { %3850 = vmatprep.mubr.f32.mxu0 %v3748_v11 }
 0x42c   : > { %3851 = vmatmul.mubr.f32.gmra.mrb[44].mxu0 %v3746_v21 }
 0x42d   : > { %6136 = vmatprep.mubr.msk.f32.mxu0 %vm3478_vm14, %v5473_v12 }
 0x4fb   : > { %v5761_v4 = vpop.f32.mrb[42].mxu0 }
 0x4fc   : > { %v5762_v5 = vpop.f32.mrb[43].mxu0 }
 0x4fd   : > { %v5763_v10 = vadd.f32 %v5762_v5, %v5761_v4 }
 0x4ff   : > { %v5764_v43 = vpop.f32.mrb[44].mxu0 }
 0x500   : > { %v5765_v13 = vpop.f32.mrb[45].mxu0 }
 0x501   : > { %v5766_v28 = vadd.f32 %v5765_v13, %v5764_v43 }
 0x503   : > { %v6669_v9 = vpack.i.bf16 %v5766_v28, %v5763_v10  ;;  %v6450_v14 = vpack.c.bf16 %v5766_v28, %v5763_v10 }
 0x505   : > { %6670 = vrot.lane.b32.xlu0 %v6669_v9, %s6780_s16  ;;  %6660 = vrot.lane.b32.xlu1 %v6669_v9, %s6781_s17 }
 0x509   : > { %6665 = vrot.lane.b32.xlu1 %v6669_v9, %s6779_s13 }
 0x577   : > { %v6661_v53 = vpop.permute.xlu1 %6660  ;;  %v6671_v34 = vpop.permute.xlu0 %6670 }
 0x578   : > { %v6663_v41 = vunpack.i.h.bf16 %v6661_v53  ;;  %v6662_v15 = vunpack.i.l.bf16 %v6661_v53  ;;  %v6673_v33 = vunpack.i.h.bf16 %v6671_v34  ;;  %v6672_v36 = vunpack.i.l.bf16 %v6671_v34  ;;  %v4469_v34 = vld [vmem:[%s8090_s11 + $0x18] sm:$0xff] }
 0x57a   : > { %v6446_v17 = vpack.c.bf16 %v6663_v41, %v6662_v15  ;;  %v6458_v39 = vpack.c.bf16 %v6673_v33, %v6672_v36  ;;  %v5558_v33 = vld [vmem:[%s8090_s11 + $0xa0] sm:$0xff]  ;;  %v4471_v36 = vld [vmem:[%s8090_s11 + $0x28] sm:$0xff] }
 0x57b   : > { %v6666_v20 = vpop.permute.xlu1 %6665 }
 0x57c   : > { %v6668_v44 = vunpack.i.h.bf16 %v6666_v20  ;;  %v6667_v23 = vunpack.i.l.bf16 %v6666_v20  ;;  %6447 = vmatprep.subr.bf16.mxu0 %v6446_v17 }
 0x57d   : > { %6449 = vmatpush3.bf16.msra.mxu0 %v6446_v17 }
 0x57e   : > { %6451 = vmatprep.subr.bf16.mxu0 %v6450_v14  ;;  %v6454_v27 = vpack.c.bf16 %v6668_v44, %v6667_v23 }
 0x580   : > { %6137 = vmatmul.mubr.msk.f32.vlgmr.msra.gmra.mrb[46].mxu0 %vm3478_vm14, %v5474_v24 }
 0x581   : > { %6453 = vmatpush3.bf16.msra.mxu0 %v6450_v14  ;;  %6139 = vmatprep.mubr.msk.f32.mxu0 %vm3478_vm14, %v5475_v25 }
 0x582   : > { %6455 = vmatprep.subr.bf16.mxu0 %v6454_v27 }
 0x584   : > { %6140 = vmatmul.mubr.msk.f32.gmra.mrb[48].mxu0 %vm3478_vm14, %v5476_v29  ;;  %v4467_v29 = vld [vmem:[%s8090_s11 + $0x8] sm:$0xff] }
 0x585   : > { %6142 = vmatprep.mubr.msk.f32.mxu0 %vm3478_vm14, %v5477_v32  ;;  %v5555_v32 = vld [vmem:[%s8090_s11 + $0x88] sm:$0xff] }
 0x588   : > { %6143 = vmatmul.mubr.msk.f32.gmra.mrb[50].mxu0 %vm3478_vm14, %v5478_v2  ;;  %v4468_v2 = vld [vmem:[%s8090_s11 + $0x10] sm:$0xff] }
 0x589   : > { %6145 = vmatprep.mubr.msk.f32.mxu0 %vm3478_vm14, %v5479_v26  ;;  %v5556_v26 = vld [vmem:[%s8090_s11 + $0x90] sm:$0xff] }
 0x58c   : > { %6146 = vmatmul.mubr.msk.f32.gmra.mrb[52].mxu0 %vm3478_vm14, %v5480_v40  ;;  %v5557_v40 = vld [vmem:[%s8090_s11 + $0x98] sm:$0xff] }
 0x58d   : > { %6152 = vmatprep.mubr.msk.f32.mxu0 %vm3478_vm14, %v3856_v35  ;;  %v4470_v35 = vld [vmem:[%s8090_s11 + $0x20] sm:$0xff] }
 0x590   : > { %6153 = vmatmul.mubr.msk.f32.vlgmr.msra.gmra.mrb[46].mxu0 %vm3478_vm14, %v3857_v37  ;;  %v5559_v37 = vld [vmem:[%s8090_s11 + $0xa8] sm:$0xff] }
 0x591   : > { %6457 = vmatpush3.bf16.msra.mxu0 %v6454_v27  ;;  %6155 = vmatprep.mubr.msk.f32.mxu0 %vm3478_vm14, %v3858_v38  ;;  %v4472_v38 = vld [vmem:[%s8090_s11 + $0x30] sm:$0xff] }
 0x592   : > { %6459 = vmatprep.subr.bf16.mxu0 %v6458_v39 }
 0x594   : > { %6156 = vmatmul.mubr.msk.f32.gmra.mrb[48].mxu0 %vm3478_vm14, %v3859_v46  ;;  %v4473_v46 = vld [vmem:[%s8090_s11 + $0x38] sm:$0xff] }
 0x595   : > { %6158 = vmatprep.mubr.msk.f32.mxu0 %vm3478_vm14, %v3860_v51  ;;  %v5561_v51 = vld [vmem:[%s8090_s11 + $0xb8] sm:$0xff] }
 0x598   : > { %6159 = vmatmul.mubr.msk.f32.gmra.mrb[50].mxu0 %vm3478_vm14, %v3861_v42  ;;  %v5538_v42 = vld [vmem:[%s8090_s11 + $0x40] sm:$0xff] }
 0x599   : > { %6161 = vmatprep.mubr.msk.f32.mxu0 %vm3478_vm14, %v3862_v45  ;;  %v5539_v45 = vld [vmem:[%s8090_s11 + $0x48] sm:$0xff] }
 0x59c   : > { %6162 = vmatmul.mubr.msk.f32.gmra.mrb[52].mxu0 %vm3478_vm14, %v3863_v30  ;;  %v5540_v30 = vld [vmem:[%s8090_s11 + $0x50] sm:$0xff] }
 0x59d   : > { %6168 = vmatprep.mubr.msk.f32.mxu0 %vm3478_vm14, %v5497_v7  ;;  %v5541_v7 = vld [vmem:[%s8090_s11 + $0x58] sm:$0xff] }
 0x5a0   : > { %6169 = vmatmul.mubr.msk.f32.vlgmr.msra.gmra.mrb[46].mxu0 %vm3478_vm14, %v5498_v52  ;;  %v5542_v52 = vld [vmem:[%s8090_s11 + $0x60] sm:$0xff] }
 0x5a1   : > { %6461 = vmatpush3.bf16.msra.mxu0 %v6458_v39  ;;  %6171 = vmatprep.mubr.msk.f32.mxu0 %vm3478_vm14, %v5499_v48  ;;  %v5560_v39 = vld [vmem:[%s8090_s11 + $0xb0] sm:$0xff]  ;;  %v5543_v48 = vld [vmem:[%s8090_s11 + $0x68] sm:$0xff] }
 0x5a4   : > { %6172 = vmatmul.mubr.msk.f32.gmra.mrb[48].mxu0 %vm3478_vm14, %v5500_v1  ;;  %v5544_v1 = vld [vmem:[%s8090_s11 + $0x70] sm:$0xff] }
 0x5a5   : > { %6174 = vmatprep.mubr.msk.f32.mxu0 %vm3478_vm14, %v5501_v50  ;;  %v5545_v50 = vld [vmem:[%s8090_s11 + $0x78] sm:$0xff] }
 0x5a8   : > { %6175 = vmatmul.mubr.msk.f32.gmra.mrb[50].mxu0 %vm3478_vm14, %v5502_v54  ;;  %v5000_v54 = vld [vmem:[%s8086_s7] sm:$0xff] }
 0x5a9   : > { %6177 = vmatprep.mubr.msk.f32.mxu0 %vm3478_vm14, %v5503_v55  ;;  %v5001_v55 = vld [vmem:[%s8086_s7 + $0x8] sm:$0xff] }
 0x5ac   : > { %6178 = vmatmul.mubr.msk.f32.gmra.mrb[52].mxu0 %vm3478_vm14, %v5504_v49  ;;  %v5002_v49 = vld [vmem:[%s8086_s7 + $0x10] sm:$0xff] }
 0x5ad   : > { %6184 = vmatprep.mubr.msk.f32.mxu0 %vm3478_vm14, %v5513_v57  ;;  %v6510_v57 = vpack.c.bf16 %v5001_v55, %v5000_v54 }
 0x5b0   : > { %6185 = vmatmul.mubr.msk.f32.vlgmr.msra.gmra.mrb[46].mxu0 %vm3478_vm14, %v5514_v0  ;;  %v5003_v0 = vld [vmem:[%s8086_s7 + $0x18] sm:$0xff] }
 0x5b1   : > { %6187 = vmatprep.mubr.msk.f32.mxu0 %vm3478_vm14, %v5515_v6  ;;  %v6514_v6 = vpack.c.bf16 %v5003_v0, %v5002_v49 }
 0x5b4   : > { %6188 = vmatmul.mubr.msk.f32.gmra.mrb[48].mxu0 %vm3478_vm14, %v5516_v58  ;;  %v5004_v58 = vld [vmem:[%s8086_s7 + $0x20] sm:$0xff] }
 0x5b5   : > { %6190 = vmatprep.mubr.msk.f32.mxu0 %vm3478_vm14, %v5517_v59  ;;  %v5005_v59 = vld [vmem:[%s8086_s7 + $0x28] sm:$0xff] }
 0x5b8   : > { %6191 = vmatmul.mubr.msk.f32.gmra.mrb[50].mxu0 %vm3478_vm14, %v5518_v31  ;;  %v6518_v31 = vpack.c.bf16 %v5005_v59, %v5004_v58 }
 0x5b9   : > { %6193 = vmatprep.mubr.msk.f32.mxu0 %vm3478_vm14, %v5519_v63  ;;  %v5006_v63 = vld [vmem:[%s8086_s7 + $0x30] sm:$0xff] }
 0x5bc   : > { %6194 = vmatmul.mubr.msk.f32.gmra.mrb[52].mxu0 %vm3478_vm14, %v5520_v56  ;;  %v5007_v56 = vld [vmem:[%s8086_s7 + $0x38] sm:$0xff] }
 0x5bd   : > { %6268 = vmatprep.mubr.msk.f32.mxu0 %vm3744_vm15, %v5554_v22  ;;  %v6522_v47 = vpack.c.bf16 %v5007_v56, %v5006_v63  ;;  %v5008_v22 = vld [vmem:[%s8086_s7 + $0x40] sm:$0xff] }
 0x683   : > { %v6186_v3 = vpop.f32.mrb[46].mxu0 }
 0x684   : > { %v7836_v8 = vadd.f32 %v6186_v3, %v5529_v60  ;;  %v4396_v62 = vpop.f32.mrb[47].mxu0 }
 0x685   : > { %v7838_v61 = vadd.f32 %v5529_v60, %v4396_v62  ;;  %v5010_v62 = vld [vmem:[%s8086_s7 + $0x50] sm:$0xff] }
 0x686   : > { %v4459_v19 = vmax.f32 %v7836_v8, 0.0 }
 0x687   : > { %v4458_v18 = vmax.f32 %v7838_v61, 0.0  ;;  %v6189_v16 = vpop.f32.mrb[48].mxu0 }
 0x688   : > { %v7842_v11 = vadd.f32 %v6189_v16, %v5529_v60  ;;  %v4406_v21 = vpop.f32.mrb[49].mxu0  ;;  %v5011_v16 = vld [vmem:[%s8086_s7 + $0x58] sm:$0xff] }
 0x689   : > { %v6462_v4 = vpack.c.bf16 %v4459_v19, %v4458_v18  ;;  %v7848_v5 = vadd.f32 %v5529_v60, %v4406_v21  ;;  %v6530_v21 = vpack.c.bf16 %v5011_v16, %v5010_v62 }
 0x68a   : > { %v4461_v10 = vmax.f32 %v7842_v11, 0.0 }
 0x68b   : > { %v4460_v12 = vmax.f32 %v7848_v5, 0.0  ;;  %v6192_v43 = vpop.f32.mrb[50].mxu0  ;;  %6463 = vmatprep.subr.bf16.mxu1 %v6462_v4  ;;  %6495 = vmatprep.subr.bf16.mxu0 %v6462_v4 }
 0x68c   : > { %v7852_v13 = vadd.f32 %v6192_v43, %v5529_v60  ;;  %v4416_v28 = vpop.f32.mrb[51].mxu0  ;;  %6465 = vmatpush3.bf16.msra.mxu1 %v6462_v4  ;;  %6497 = vmatpush3.bf16.msra.mxu0 %v6462_v4  ;;  %v5013_v43 = vld [vmem:[%s8086_s7 + $0x68] sm:$0xff] }
 0x68d   : > { %v6466_v9 = vpack.c.bf16 %v4461_v10, %v4460_v12  ;;  %v7858_v14 = vadd.f32 %v5529_v60, %v4416_v28 }
 0x68e   : > { %v4463_v53 = vmax.f32 %v7852_v13, 0.0 }
 0x68f   : > { %v4462_v41 = vmax.f32 %v7858_v14, 0.0  ;;  %v6195_v15 = vpop.f32.mrb[52].mxu0  ;;  %6467 = vmatprep.subr.bf16.mxu1 %v6466_v9  ;;  %6499 = vmatprep.subr.bf16.mxu0 %v6466_v9 }
 0x690   : > { %v7862_v17 = vadd.f32 %v6195_v15, %v5529_v60  ;;  %v4426_v20 = vpop.f32.mrb[53].mxu0  ;;  %6469 = vmatpush3.bf16.msra.mxu1 %v6466_v9  ;;  %6501 = vmatpush3.bf16.msra.mxu0 %v6466_v9 }
 0x691   : > { %v6470_v44 = vpack.c.bf16 %v4463_v53, %v4462_v41  ;;  %v7868_v23 = vadd.f32 %v5529_v60, %v4426_v20  ;;  %v5009_v60 = vld [vmem:[%s8086_s7 + $0x48] sm:$0xff] }
 0x692   : > { %v4465_v24 = vmax.f32 %v7862_v17, 0.0  ;;  %v6526_v3 = vpack.c.bf16 %v5009_v60, %v5008_v22  ;;  %v5570_v60 = vld [vmem:[#allocation3] ss:$0 sm:$0xff] }
 0x693   : > { %v4464_v25 = vmax.f32 %v7868_v23, 0.0  ;;  %6471 = vmatprep.subr.bf16.mxu1 %v6470_v44  ;;  %6503 = vmatprep.subr.bf16.mxu0 %v6470_v44 }
 0x694   : > { %6473 = vmatpush3.bf16.msra.mxu1 %v6470_v44  ;;  %6505 = vmatpush3.bf16.msra.mxu0 %v6470_v44 }
 0x695   : > { %v6474_v27 = vpack.c.bf16 %v4465_v24, %v4464_v25 }
 0x697   : > { %6475 = vmatprep.subr.bf16.mxu1 %v6474_v27  ;;  %6507 = vmatprep.subr.bf16.mxu0 %v6474_v27 }
 0x698   : > { %6477 = vmatpush3.bf16.msra.mxu1 %v6474_v27  ;;  %6509 = vmatpush3.bf16.msra.mxu0 %v6474_v27 }
 0x699   : > { %6479 = vmatprep.subr.bf16.mxu1 %v6462_v4 }
 0x69b   : > { %6213 = vmatmul.mubr.msk.f32.vlgmr.msra.gmra.mrb[8].mxu1 %vm3744_vm15, %v4467_v29  ;;  %6269 = vmatmul.mubr.msk.f32.vlgmr.msra.gmra.mrb[54].mxu0 %vm3744_vm15, %v5555_v32 }
 0x69c   : > { %6481 = vmatpush3.bf16.msra.mxu1 %v6462_v4  ;;  %6215 = vmatprep.mubr.msk.f32.mxu1 %vm3744_vm15, %v4468_v2  ;;  %v5012_v4 = vld [vmem:[%s8086_s7 + $0x60] sm:$0xff] }
 0x69d   : > { %6483 = vmatprep.subr.bf16.mxu1 %v6466_v9  ;;  %6271 = vmatprep.mubr.msk.f32.mxu0 %vm3744_vm15, %v5556_v26  ;;  %v6534_v15 = vpack.c.bf16 %v5013_v43, %v5012_v4 }
 0x69f   : > { %6216 = vmatmul.mubr.msk.f32.gmra.mrb[10].mxu1 %vm3744_vm15, %v4469_v34  ;;  %6272 = vmatmul.mubr.msk.f32.gmra.mrb[56].mxu0 %vm3744_vm15, %v5557_v40 }
 0x6a0   : > { %6485 = vmatpush3.bf16.msra.mxu1 %v6466_v9  ;;  %6218 = vmatprep.mubr.msk.f32.mxu1 %vm3744_vm15, %v4470_v35 }
 0x6a1   : > { %6487 = vmatprep.subr.bf16.mxu1 %v6470_v44  ;;  %6274 = vmatprep.mubr.msk.f32.mxu0 %vm3744_vm15, %v5558_v33  ;;  %v5014_v33 = vld [vmem:[%s8086_s7 + $0x70] sm:$0xff] }
 0x6a3   : > { %6219 = vmatmul.mubr.msk.f32.gmra.mrb[12].mxu1 %vm3744_vm15, %v4471_v36  ;;  %6275 = vmatmul.mubr.msk.f32.gmra.mrb[58].mxu0 %vm3744_vm15, %v5559_v37  ;;  %v5015_v36 = vld [vmem:[%s8086_s7 + $0x78] sm:$0xff] }
 0x6a4   : > { %6489 = vmatpush3.bf16.msra.mxu1 %v6470_v44  ;;  %6221 = vmatprep.mubr.msk.f32.mxu1 %vm3744_vm15, %v4472_v38  ;;  %v6538_v37 = vpack.c.bf16 %v5015_v36, %v5014_v33 }
 0x6a5   : > { %6491 = vmatprep.subr.bf16.mxu1 %v6474_v27  ;;  %6277 = vmatprep.mubr.msk.f32.mxu0 %vm3744_vm15, %v5560_v39 }
 0x6a7   : > { %6222 = vmatmul.mubr.msk.f32.gmra.mrb[14].mxu1 %vm3744_vm15, %v4473_v46  ;;  %6278 = vmatmul.mubr.msk.f32.gmra.mrb[60].mxu0 %vm3744_vm15, %v5561_v51 }
 0x6a8   : > { %6493 = vmatpush3.bf16.msra.mxu1 %v6474_v27  ;;  %6240 = vmatprep.mubr.msk.f32.mxu1 %vm3744_vm15, %v5538_v42 }
 0x6a9   : > { %6511 = vmatprep.subr.bf16.mxu1 %v6510_v57 }
 0x6ab   : > { %6241 = vmatmul.mubr.msk.f32.vlgmr.msra.gmra.mrb[16].mxu1 %vm3744_vm15, %v5539_v45 }
 0x6ac   : > { %6243 = vmatprep.mubr.msk.f32.mxu1 %vm3744_vm15, %v5540_v30  ;;  %6513 = vmatpush3.bf16.msra.mxu1 %v6510_v57 }
 0x6ad   : > { %6515 = vmatprep.subr.bf16.mxu1 %v6514_v6 }
 0x6af   : > { %6244 = vmatmul.mubr.msk.f32.gmra.mrb[18].mxu1 %vm3744_vm15, %v5541_v7 }
 0x6b0   : > { %6246 = vmatprep.mubr.msk.f32.mxu1 %vm3744_vm15, %v5542_v52  ;;  %6517 = vmatpush3.bf16.msra.mxu1 %v6514_v6 }
 0x6b1   : > { %6519 = vmatprep.subr.bf16.mxu1 %v6518_v31 }
 0x6b3   : > { %6247 = vmatmul.mubr.msk.f32.gmra.mrb[20].mxu1 %vm3744_vm15, %v5543_v48 }
 0x6b4   : > { %6249 = vmatprep.mubr.msk.f32.mxu1 %vm3744_vm15, %v5544_v1  ;;  %6521 = vmatpush3.bf16.msra.mxu1 %v6518_v31 }
 0x6b5   : > { %6523 = vmatprep.subr.bf16.mxu1 %v6522_v47 }
 0x6b7   : > { %6250 = vmatmul.mubr.msk.f32.gmra.mrb[22].mxu1 %vm3744_vm15, %v5545_v50 }
 0x6b8   : > { %6525 = vmatpush3.bf16.msra.mxu1 %v6522_v47  ;;  %v6782_v47 = vmov 0  }
 0x6b9   : > { %6527 = vmatprep.subr.bf16.mxu1 %v6526_v3  ;;  %6734 = vset.pattern.permute.xlu1 %v6782_v47 }
 0x6ba   : > { %6735 = vset.pattern.permute.xlu0 %v6782_v47 }
 0x6bc   : > { %6529 = vmatpush3.bf16.msra.mxu1 %v6526_v3 }
 0x6bd   : > { %6531 = vmatprep.subr.bf16.mxu1 %v6530_v21 }
 0x6c0   : > { %6533 = vmatpush3.bf16.msra.mxu1 %v6530_v21 }
 0x6c1   : > { %6535 = vmatprep.subr.bf16.mxu1 %v6534_v15 }
 0x6c4   : > { %6537 = vmatpush3.bf16.msra.mxu1 %v6534_v15 }
 0x6c5   : > { %6539 = vmatprep.subr.bf16.mxu1 %v6538_v37 }
 0x6c8   : > { %6541 = vmatpush3.bf16.msra.mxu1 %v6538_v37 }
 0x76e   : > { %v6214_v28 = vpop.f32.mrb[8].mxu1  ;;  %v6270_v9 = vpop.f32.mrb[54].mxu0 }
 0x76f   : > { %v4564_v20 = vpop.f32.mrb[9].mxu1  ;;  %v4840_v44 = vpop.f32.mrb[55].mxu0 }
 0x770   : > { %v6674_v27 = vpack.i.bf16 %v6214_v28, %v4564_v20  ;;  %v6679_v29 = vpack.i.bf16 %v6270_v9, %v4840_v44 }
 0x772   : > { %6675 = vrot.lane.b32.xlu1 %v6674_v27, %s6780_s16  ;;  %v6217_v32 = vpop.f32.mrb[10].mxu1  ;;  %v6273_v2 = vpop.f32.mrb[56].mxu0 }
 0x773   : > { %v4574_v26 = vpop.f32.mrb[11].mxu1  ;;  %v4850_v34 = vpop.f32.mrb[57].mxu0 }
 0x774   : > { %v6684_v40 = vpack.i.bf16 %v6217_v32, %v4574_v26  ;;  %v6694_v35 = vpack.i.bf16 %v6273_v2, %v4850_v34 }
 0x776   : > { %6680 = vrot.lane.b32.xlu1 %v6679_v29, %s6781_s17  ;;  %6685 = vrot.lane.b32.xlu0 %v6684_v40, %s6780_s16  ;;  %v6220_v38 = vpop.f32.mrb[12].mxu1  ;;  %v6276_v39 = vpop.f32.mrb[58].mxu0 }
 0x777   : > { %v4584_v46 = vpop.f32.mrb[13].mxu1  ;;  %v4860_v51 = vpop.f32.mrb[59].mxu0 }
 0x778   : > { %v6699_v42 = vpack.i.bf16 %v6220_v38, %v4584_v46  ;;  %v6709_v45 = vpack.i.bf16 %v6276_v39, %v4860_v51 }
 0x77a   : > { %6700 = vrot.lane.b32.xlu1 %v6699_v42, %s6780_s16  ;;  %v6223_v30 = vpop.f32.mrb[14].mxu1  ;;  %v6279_v7 = vpop.f32.mrb[60].mxu0 }
 0x77b   : > { %v4594_v52 = vpop.f32.mrb[15].mxu1  ;;  %v4870_v48 = vpop.f32.mrb[61].mxu0 }
 0x77c   : > { %v6719_v1 = vpack.i.bf16 %v6223_v30, %v4594_v52  ;;  %v6729_v50 = vpack.i.bf16 %v6279_v7, %v4870_v48 }
 0x77e   : > { %v6242_v54 = vpop.f32.mrb[16].mxu1 }
 0x77f   : > { %v4702_v55 = vpop.f32.mrb[17].mxu1 }
 0x780   : > { %v6689_v49 = vpack.i.bf16 %v6242_v54, %v4702_v55 }
 0x782   : > { %6690 = vrot.lane.b32.xlu0 %v6689_v49, %s6779_s13  ;;  %v6245_v57 = vpop.f32.mrb[18].mxu1 }
 0x783   : > { %v4712_v0 = vpop.f32.mrb[19].mxu1 }
 0x784   : > { %v6704_v6 = vpack.i.bf16 %v6245_v57, %v4712_v0 }
 0x786   : > { %6695 = vrot.lane.b32.xlu0 %v6694_v35, %s6781_s17  ;;  %6705 = vrot.lane.b32.xlu1 %v6704_v6, %s6779_s13  ;;  %v6248_v58 = vpop.f32.mrb[20].mxu1 }
 0x787   : > { %v4722_v59 = vpop.f32.mrb[21].mxu1 }
 0x788   : > { %v6714_v31 = vpack.i.bf16 %v6248_v58, %v4722_v59 }
 0x78a   : > { %6715 = vrot.lane.b32.xlu0 %v6714_v31, %s6779_s13  ;;  %6710 = vrot.lane.b32.xlu1 %v6709_v45, %s6781_s17  ;;  %v6251_v63 = vpop.f32.mrb[22].mxu1 }
 0x78b   : > { %v4732_v56 = vpop.f32.mrb[23].mxu1 }
 0x78c   : > { %v6724_v22 = vpack.i.bf16 %v6251_v63, %v4732_v56 }
 0x78e   : > { %6720 = vrot.lane.b32.xlu0 %v6719_v1, %s6780_s16  ;;  %6725 = vrot.lane.b32.xlu1 %v6724_v22, %s6779_s13  ;;  %s5574_s13 = sshll.u32 %s8093_s24, 6 }
 0x78f   : > { %s415_s22 = scalar_lea.vmem %s8091_s12, %s5574_s13 }
 0x792   : > { %6730 = vrot.lane.b32.xlu0 %v6729_v50, %s6781_s17  ;;  %5023 = vperm.xlu1 %6734, %v5570_v60  }
 0x7e4   : > { %v6676_v3 = vpop.permute.xlu1 %6675 }
 0x7e5   : > { %v6678_v21 = vunpack.i.h.bf16 %v6676_v3  ;;  %v6677_v4 = vunpack.i.l.bf16 %v6676_v3 }
 0x7e7   : > { %v4976_v9 = vsel %vm1439_vm4, %v4459_v19, %v6678_v21  ;;  %v4975_v44 = vsel %vm1439_vm4, %v4458_v18, %v6677_v4 }
 0x7e8   : > { %v6681_v62 = vpop.permute.xlu1 %6680  ;;  %v6686_v16 = vpop.permute.xlu0 %6685 }
 0x7e9   : > { %v6683_v27 = vunpack.i.h.bf16 %v6681_v62  ;;  %v6682_v29 = vunpack.i.l.bf16 %v6681_v62  ;;  %v6688_v32 = vunpack.i.h.bf16 %v6686_v16  ;;  %v6687_v2 = vunpack.i.l.bf16 %v6686_v16 }
 0x7eb   : > { %v4977_v39 = vsel %vm1439_vm4, %v4460_v12, %v6687_v2  ;;  %v4978_v46 = vsel %vm1439_vm4, %v4461_v10, %v6688_v32 }
 0x7ec   : > { %v6701_v43 = vpop.permute.xlu1 %6700 }
 0x7ed   : > { %v6703_v18 = vunpack.i.h.bf16 %v6701_v43  ;;  %v6702_v38 = vunpack.i.l.bf16 %v6701_v43 }
 0x7ef   : > { %v4979_v11 = vsel %vm1439_vm4, %v4462_v41, %v6702_v38  ;;  %v4980_v10 = vsel %vm1439_vm4, %v4463_v53, %v6703_v18 }
 0x7f4   : > { %v6691_v28 = vpop.permute.xlu0 %6690 }
 0x7f5   : > { %v6693_v15 = vunpack.i.h.bf16 %v6691_v28  ;;  %v6692_v20 = vunpack.i.l.bf16 %v6691_v28 }
 0x7f7   : > { %v4984_v26 = vsel %vm3744_vm15, %v4976_v9, %v6693_v15  ;;  %v4983_v34 = vsel %vm3744_vm15, %v4975_v44, %v6692_v20 }
 0x7f8   : > { %v6696_v40 = vpop.permute.xlu0 %6695  ;;  %v6706_v35 = vpop.permute.xlu1 %6705  ;;  %v4992_v8 = vsel %vm4991_vm0, %v4983_v34, %v6682_v29  ;;  %v4993_v19 = vsel %vm4991_vm0, %v4984_v26, %v6683_v27 }
 0x7f9   : > { %v6698_v33 = vunpack.i.h.bf16 %v6696_v40  ;;  %v6697_v36 = vunpack.i.l.bf16 %v6696_v40  ;;  %v6708_v37 = vunpack.i.h.bf16 %v6706_v35  ;;  %v6707_v61 = vunpack.i.l.bf16 %v6706_v35  ;;  %6312 = vmatprep.mubr.f32.mxu1 %v4992_v8 }
 0x7fa   : > { %6313 = vmatmul.mubr.f32.vlgmr.msra.gmra.mrb[24].mxu1 %v4993_v19 }
 0x7fb   : > { %v4985_v51 = vsel %vm3744_vm15, %v4977_v39, %v6707_v61  ;;  %v4986_v42 = vsel %vm3744_vm15, %v4978_v46, %v6708_v37 }
 0x7fc   : > { %v6716_v45 = vpop.permute.xlu0 %6715  ;;  %v6711_v30 = vpop.permute.xlu1 %6710  ;;  %v4994_v7 = vsel %vm4991_vm0, %v4985_v51, %v6697_v36  ;;  %v4995_v52 = vsel %vm4991_vm0, %v4986_v42, %v6698_v33 }
 0x7fd   : > { %v6718_v48 = vunpack.i.h.bf16 %v6716_v45  ;;  %v6717_v1 = vunpack.i.l.bf16 %v6716_v45  ;;  %v6713_v50 = vunpack.i.h.bf16 %v6711_v30  ;;  %v6712_v5 = vunpack.i.l.bf16 %v6711_v30  ;;  %6315 = vmatprep.mubr.f32.mxu1 %v4994_v7 }
 0x7fe   : > { %6316 = vmatmul.mubr.f32.gmra.mrb[26].mxu1 %v4995_v52 }
 0x7ff   : > { %v4987_v12 = vsel %vm3744_vm15, %v4979_v11, %v6717_v1  ;;  %v4988_v54 = vsel %vm3744_vm15, %v4980_v10, %v6718_v48 }
 0x800   : > { %v6721_v55 = vpop.permute.xlu0 %6720  ;;  %v4996_v49 = vsel %vm4991_vm0, %v4987_v12, %v6712_v5  ;;  %v6726_v57 = vpop.permute.xlu1 %6725  ;;  %v4997_v0 = vsel %vm4991_vm0, %v4988_v54, %v6713_v50 }
 0x801   : > { %v6723_v6 = vunpack.i.h.bf16 %v6721_v55  ;;  %v6722_v58 = vunpack.i.l.bf16 %v6721_v55  ;;  %6318 = vmatprep.mubr.f32.mxu1 %v4996_v49  ;;  %v6728_v14 = vunpack.i.h.bf16 %v6726_v57  ;;  %v6727_v59 = vunpack.i.l.bf16 %v6726_v57 }
 0x802   : > { %6319 = vmatmul.mubr.f32.gmra.mrb[28].mxu1 %v4997_v0 }
 0x803   : > { %v4981_v13 = vsel %vm1439_vm4, %v4464_v25, %v6722_v58  ;;  %v4982_v53 = vsel %vm1439_vm4, %v4465_v24, %v6723_v6 }
 0x804   : > { %v6731_v41 = vpop.permute.xlu0 %6730  ;;  %v4989_v56 = vsel %vm3744_vm15, %v4981_v13, %v6727_v59  ;;  %v4990_v47 = vsel %vm3744_vm15, %v4982_v53, %v6728_v14 }
 0x805   : > { %v6733_v31 = vunpack.i.h.bf16 %v6731_v41  ;;  %v6732_v63 = vunpack.i.l.bf16 %v6731_v41 }
 0x807   : > { %v4998_v22 = vsel %vm4991_vm0, %v4989_v56, %v6732_v63  ;;  %v4999_v60 = vsel %vm4991_vm0, %v4990_v47, %v6733_v31 }
 0x808   : > { %6321 = vmatprep.mubr.f32.mxu1 %v4998_v22 }
 0x809   : > { %6322 = vmatmul.mubr.f32.gmra.mrb[30].mxu1 %v4999_v60 }
 0x811   : > { %v5024_v23 = vpop.permute.xlu1 %5023 }
 0x8cd   : > { %v6314_v3 = vpop.f32.mrb[24].mxu1 }
 0x8ce   : > { %v5098_v25 = vadd.f32 %v6314_v3, %v5024_v23  ;;  %v5092_v62 = vpop.f32.mrb[25].mxu1 }
 0x8cf   : > { %v5093_v17 = vadd.f32 %v5092_v62, %v5024_v23 }
 0x8d0   : > { %v5132_v16 = vsub.f32 0.0, %v5098_v25 }
 0x8d1   : > { %v5131_v24 = vsub.f32 0.0, %v5093_v17  ;;  %v6317_v21 = vpop.f32.mrb[26].mxu1 }
 0x8d2   : > { %v5141_v4 = vmul.f32 1.442695, %v5132_v16  ;;  %v5108_v43 = vadd.f32 %v6317_v21, %v5024_v23  ;;  %v5102_v28 = vpop.f32.mrb[27].mxu1 }
 0x8d3   : > { %v5139_v9 = vmul.f32 1.442695, %v5131_v24  ;;  %v5103_v15 = vadd.f32 %v5102_v28, %v5024_v23 }
 0x8d4   : > { %6736 = vpow2.f32 %v5141_v4  ;;  %v5134_v20 = vsub.f32 0.0, %v5108_v43 }
 0x8d5   : > { %6738 = vpow2.f32 %v5139_v9  ;;  %v5133_v44 = vsub.f32 0.0, %v5103_v15  ;;  %v6320_v27 = vpop.f32.mrb[28].mxu1 }
 0x8d6   : > { %v5145_v29 = vmul.f32 1.442695, %v5134_v20  ;;  %v5118_v32 = vadd.f32 %v6320_v27, %v5024_v23  ;;  %v5112_v2 = vpop.f32.mrb[29].mxu1 }
 0x8d7   : > { %v5143_v26 = vmul.f32 1.442695, %v5133_v44  ;;  %v5113_v34 = vadd.f32 %v5112_v2, %v5024_v23 }
 0x8d8   : > { %6740 = vpow2.f32 %v5145_v29  ;;  %v5136_v40 = vsub.f32 0.0, %v5118_v32 }
 0x8d9   : > { %6742 = vpow2.f32 %v5143_v26  ;;  %v5135_v35 = vsub.f32 0.0, %v5113_v34 }
 0x8da   : > { %v5149_v8 = vmul.f32 1.442695, %v5136_v40 }
 0x8db   : > { %v5147_v19 = vmul.f32 1.442695, %v5135_v35 }
 0x8dc   : > { %6744 = vpow2.f32 %v5149_v8  ;;  %v6323_v33 = vpop.f32.mrb[30].mxu1 }
 0x8dd   : > { %6746 = vpow2.f32 %v5147_v19  ;;  %v5128_v36 = vadd.f32 %v6323_v33, %v5024_v23  ;;  %v5122_v37 = vpop.f32.mrb[31].mxu1 }
 0x8de   : > { %v6737_v61 = vpop.eup %6736  ;;  %v5123_v18 = vadd.f32 %v5122_v37, %v5024_v23 }
 0x8df   : > { %v6739_v38 = vpop.eup %6738  ;;  %v5156_v39 = vadd.f32 1.0, %v6737_v61  ;;  %v5138_v46 = vsub.f32 0.0, %v5128_v36 }
 0x8e0   : > { %v5155_v51 = vadd.f32 1.0, %v6739_v38  ;;  %v5137_v42 = vsub.f32 0.0, %v5123_v18 }
 0x8e1   : > { %6748 = vrcp.f32 %v5156_v39  ;;  %v5153_v45 = vmul.f32 1.442695, %v5138_v46 }
 0x8e2   : > { %v6741_v30 = vpop.eup %6740  ;;  %6750 = vrcp.f32 %v5155_v51  ;;  %v5151_v7 = vmul.f32 1.442695, %v5137_v42 }
 0x8e3   : > { %v6743_v52 = vpop.eup %6742  ;;  %v5158_v48 = vadd.f32 1.0, %v6741_v30  ;;  %6752 = vpow2.f32 %v5153_v45 }
 0x8e4   : > { %v5157_v1 = vadd.f32 1.0, %v6743_v52  ;;  %6754 = vpow2.f32 %v5151_v7 }
 0x8e5   : > { %6756 = vrcp.f32 %v5158_v48 }
 0x8e6   : > { %v6745_v50 = vpop.eup %6744  ;;  %6758 = vrcp.f32 %v5157_v1 }
 0x8e7   : > { %v6747_v5 = vpop.eup %6746  ;;  %v5160_v11 = vadd.f32 1.0, %v6745_v50 }
 0x8e8   : > { %v5159_v10 = vadd.f32 1.0, %v6747_v5 }
 0x8e9   : > { %6760 = vrcp.f32 %v5160_v11 }
 0x8ea   : > { %6762 = vrcp.f32 %v5159_v10 }
 0x8eb   : > { %v6749_v12 = vpop.eup %6748 }
 0x8ec   : > { %v6751_v54 = vpop.eup %6750  ;;  %5173 = vst.msk [vmem:[%s415_s22 + $0x8] sm:$0xff] %vm5171_vm1, %v6749_v12 }
 0x8ed   : > { %v6753_v55 = vpop.eup %6752  ;;  %5172 = vst.msk [vmem:[%s415_s22] sm:$0xff] %vm5171_vm1, %v6751_v54 }
 0x8ee   : > { %v6755_v49 = vpop.eup %6754  ;;  %v5162_v57 = vadd.f32 1.0, %v6753_v55 }
 0x8ef   : > { %v6757_v0 = vpop.eup %6756  ;;  %v5161_v6 = vadd.f32 1.0, %v6755_v49 }
 0x8f0   : > { %v6759_v58 = vpop.eup %6758  ;;  %5175 = vst.msk [vmem:[%s415_s22 + $0x18] sm:$0xff] %vm5171_vm1, %v6757_v0  ;;  %6764 = vrcp.f32 %v5162_v57 }
 0x8f1   : > { %5174 = vst.msk [vmem:[%s415_s22 + $0x10] sm:$0xff] %vm5171_vm1, %v6759_v58  ;;  %6766 = vrcp.f32 %v5161_v6 }
 0x8f3   : > { %v6761_v14 = vpop.eup %6760 }
 0x8f4   : > { %v6763_v59 = vpop.eup %6762  ;;  %5177 = vst.msk [vmem:[%s415_s22 + $0x28] sm:$0xff] %vm5171_vm1, %v6761_v14 }
 0x8f5   : > { %5176 = vst.msk [vmem:[%s415_s22 + $0x20] sm:$0xff] %vm5171_vm1, %v6763_v59 }
 0x8fa   : > { %v6765_v13 = vpop.eup %6764 }
 0x8fb   : > { %v6767_v53 = vpop.eup %6766  ;;  %5179 = vst.msk [vmem:[%s415_s22 + $0x38] sm:$0xff] %vm5171_vm1, %v6765_v13 }
 0x8fc   : > { %5178 = vst.msk [vmem:[%s415_s22 + $0x30] sm:$0xff] %vm5171_vm1, %v6767_v53 }
 0x8fd PF: > { %s24_s23 = sadd.s32 1, %s6774_s23  }
 0x8fe   : > { %p21_p4 = scmp.ge.s32.totalorder %s24_s23, 4  }
 0x900   :  { %23 = sbr.rel (!%p21_p4) target bundleno = 3 (0x3), region = 116 }

</bundles_post_ra>
